<compile_context>
chip_gen: v7x
topology: tpu7x:2x2x1
jax: 0.10.0
libtpu: 0.0.40
codegen_flags: <defaults>
</compile_context>

<pallas_src>
import functools

import jax
import jax.numpy as jnp
from jax.experimental import pallas as pl
from jax.experimental.pallas import tpu as pltpu


_VMEM_LIMIT_BYTES = 32 * 1024 * 1024   # safe on v5e/v6e (128 MiB) and v7x (64 MiB)
_MAX_BATCH_UNROLL = 8                  # cap static unroll of the fused per-batch loop


# ---------------------------------------------------------------------------
# Shared tiny squeeze-excite MLP (f32, runs once per batch element).
# ---------------------------------------------------------------------------
def _se_scale(avg, mx, w1, w2):
    """sigmoid(fc2(relu(fc1(avg)) + relu(fc1(max)))), stats stacked as (C, 2)."""
    hi = jax.lax.Precision.HIGHEST
    stats = jnp.concatenate([avg, mx], axis=1)                         # (C, 2)
    h = jnp.maximum(jnp.dot(w1, stats, precision=hi,
                            preferred_element_type=jnp.float32), 0.0)  # (Cr, 2)
    h = h[:, 0:1] + h[:, 1:2]                                          # (Cr, 1)
    # fc2 is linear: fc2(relu(a)) + fc2(relu(m)) == fc2(relu(a) + relu(m)).
    logits = jnp.dot(w2, h, precision=hi,
                     preferred_element_type=jnp.float32)               # (C, 1)
    return 1.0 / (1.0 + jnp.exp(-logits))                              # (C, 1)


# ---------------------------------------------------------------------------
# Fused single-pass kernel: pool + MLP + sigmoid + multiply in one grid step.
# x_ref / o_ref: (Bb, C, HW)   w1_ref: (Cr, C)   w2_ref: (C, Cr)
# ---------------------------------------------------------------------------
def fused_kernel(w1_ref, w2_ref, x_ref, o_ref, *, hw, bb):
    w1 = w1_ref[...]
    w2 = w2_ref[...]
    inv_hw = jnp.float32(1.0 / hw)
    for b in range(bb):                                   # bb is a small static int
        xb = x_ref[b].astype(jnp.float32)                 # (C, HW)
        avg = jnp.sum(xb, axis=1, keepdims=True) * inv_hw  # (C, 1)
        mx = jnp.max(xb, axis=1, keepdims=True)            # (C, 1)
        scale = _se_scale(avg, mx, w1, w2)                  # (C, 1)
        o_ref[b] = (xb * scale).astype(o_ref.dtype)         # lane-broadcast multiply


# ---------------------------------------------------------------------------
# Tiled path, pass 1: pooled stats (VMEM scratch accumulators) -> scale.
# x_ref: (C, T)   scale_ref: (C, 1)   sum_sc/max_sc: (C, 1) f32 scratch
# ---------------------------------------------------------------------------
def pool_scale_kernel(x_ref, w1_ref, w2_ref, scale_ref, sum_sc, max_sc, *, hw, tile):
    s = pl.program_id(1)
    last = pl.num_programs(1) - 1

    @pl.when(s == 0)
    def _():
        sum_sc[...] = jnp.zeros_like(sum_sc)
        max_sc[...] = jnp.full_like(max_sc, -jnp.inf)

    def accumulate(masked):
        xt = x_ref[...].astype(jnp.float32)                 # (C, T)
        if masked:
            col = jax.lax.broadcasted_iota(jnp.int32, xt.shape, 1)
            valid = (s * tile + col) < hw
            x_sum = jnp.where(valid, xt, 0.0)
            x_max = jnp.where(valid, xt, -jnp.inf)
        else:
            x_sum, x_max = xt, xt
        sum_sc[...] += jnp.sum(x_sum, axis=1, keepdims=True)
        max_sc[...] = jnp.maximum(max_sc[...], jnp.max(x_max, axis=1, keepdims=True))

    if hw % tile != 0:
        # Steady-state tiles stay mask-free; only the ragged final tile masks.
        @pl.when(s < last)
        def _():
            accumulate(False)

        @pl.when(s == last)
        def _():
            accumulate(True)
    else:
        accumulate(False)

    @pl.when(s == last)
    def _():
        avg = sum_sc[...] * jnp.float32(1.0 / hw)
        scale_ref[...] = _se_scale(avg, max_sc[...], w1_ref[...], w2_ref[...])


# ---------------------------------------------------------------------------
# Tiled path, pass 2: pure broadcast multiply (load / mul / store stream).
# scale_ref: (C, 1)   x_ref / o_ref: (C, T)
# ---------------------------------------------------------------------------
def apply_scale_kernel(scale_ref, x_ref, o_ref):
    o_ref[...] = (x_ref[...].astype(jnp.float32) * scale_ref[...]).astype(o_ref.dtype)


# ---------------------------------------------------------------------------
# Wrapper
# ---------------------------------------------------------------------------
def channel_attention_forward(x, w1, w2, *,
                              fuse_slice_limit_bytes=2 * 1024 * 1024,
                              block_target_bytes=2 * 1024 * 1024):
    """x: (B, C, H, W) ; w1: (C//r, C) ; w2: (C, C//r)  ->  (B, C, H, W) in x.dtype."""
    B, C, H, W = x.shape
    Cr = w1.shape[0]
    assert w1.shape == (Cr, C) and w2.shape == (C, Cr)

    hw = H * W
    x3 = x.reshape(B, C, hw)                       # spatial on the lane (fast) axis
    w1 = w1.astype(jnp.float32)
    w2 = w2.astype(jnp.float32)

    slice_f32_bytes = C * hw * 4                   # f32 footprint of one (C, HW) slice

    # ---------------- fused single-pass path ----------------
    if slice_f32_bytes <= fuse_slice_limit_bytes:
        bb_limit = max(1, min(_MAX_BATCH_UNROLL,
                              (2 * fuse_slice_limit_bytes) // max(slice_f32_bytes, 1)))
        bb = 1
        for d in range(1, B + 1):                  # largest divisor of B <= bb_limit
            if B % d == 0 and d <= bb_limit:
                bb = d

        out = pl.pallas_call(
            functools.partial(fused_kernel, hw=hw, bb=bb),
            out_shape=jax.ShapeDtypeStruct((B, C, hw), x.dtype),
            grid_spec=pltpu.PrefetchScalarGridSpec(
                num_scalar_prefetch=0,
                grid=(B // bb,),
                in_specs=[
                    pl.BlockSpec((Cr, C), lambda i: (0, 0)),          # w1 (full)
                    pl.BlockSpec((C, Cr), lambda i: (0, 0)),          # w2 (full)
                    pl.BlockSpec((bb, C, hw), lambda i: (i, 0, 0)),   # x block
                ],
                out_specs=pl.BlockSpec((bb, C, hw), lambda i: (i, 0, 0)),
            ),
            compiler_params=pltpu.CompilerParams(
                dimension_semantics=("parallel",),
                vmem_limit_bytes=_VMEM_LIMIT_BYTES),
        )(w1, w2, x3)
        return out.reshape(B, C, H, W)

    # ---------------- tiled two-pass path (large HW) ----------------
    itemsize = jnp.dtype(x.dtype).itemsize

    def _pick_tile(target_bytes):
        t = target_bytes // max(C * itemsize, 1)
        t = max((t // 128) * 128, 128)             # lane-tile multiple of 128
        return hw if t >= hw else t

    T1 = _pick_tile(block_target_bytes)
    n1 = (hw + T1 - 1) // T1

    scale = pl.pallas_call(
        functools.partial(pool_scale_kernel, hw=hw, tile=T1),
        out_shape=jax.ShapeDtypeStruct((B, C, 1), jnp.float32),
        grid_spec=pltpu.PrefetchScalarGridSpec(
            num_scalar_prefetch=0,
            grid=(B, n1),
            in_specs=[
                pl.BlockSpec((None, C, T1), lambda b, s: (b, 0, s)),  # x tile
                pl.BlockSpec((Cr, C), lambda b, s: (0, 0)),           # w1 (resident)
                pl.BlockSpec((C, Cr), lambda b, s: (0, 0)),           # w2 (resident)
            ],
            out_specs=pl.BlockSpec((None, C, 1), lambda b, s: (b, 0, 0)),
            scratch_shapes=[pltpu.VMEM((C, 1), jnp.float32),          # sum accumulator
                            pltpu.VMEM((C, 1), jnp.float32)],         # max accumulator
        ),
        compiler_params=pltpu.CompilerParams(
            dimension_semantics=("parallel", "arbitrary"),
            vmem_limit_bytes=_VMEM_LIMIT_BYTES),
    )(x3, w1, w2)

    T2 = _pick_tile(block_target_bytes)
    n2 = (hw + T2 - 1) // T2

    out = pl.pallas_call(
        apply_scale_kernel,
        out_shape=jax.ShapeDtypeStruct((B, C, hw), x.dtype),
        grid_spec=pltpu.PrefetchScalarGridSpec(
            num_scalar_prefetch=0,
            grid=(B, n2),
            in_specs=[
                pl.BlockSpec((None, C, 1), lambda b, s: (b, 0, 0)),   # scale
                pl.BlockSpec((None, C, T2), lambda b, s: (b, 0, s)),  # x tile
            ],
            out_specs=pl.BlockSpec((None, C, T2), lambda b, s: (b, 0, s)),
        ),
        compiler_params=pltpu.CompilerParams(
            dimension_semantics=("parallel", "parallel"),
            vmem_limit_bytes=_VMEM_LIMIT_BYTES),
    )(scale, x3)

    return out.reshape(B, C, H, W)


# ---------------------------------------------------------------------------
# Pure-JAX reference mirroring the PyTorch forward exactly (computed in f32).
# ---------------------------------------------------------------------------
def channel_attention_reference(x, w1, w2):
    hi = jax.lax.Precision.HIGHEST
    xf = x.astype(jnp.float32)
    w1 = w1.astype(jnp.float32)
    w2 = w2.astype(jnp.float32)
    avg = jnp.mean(xf, axis=(2, 3))                # (B, C)
    mx = jnp.max(xf, axis=(2, 3))                  # (B, C)

    def mlp(v):
        h = jnp.maximum(jnp.dot(v, w1.T, precision=hi), 0.0)
        return jnp.dot(h, w2.T, precision=hi)

    scale = jax.nn.sigmoid(mlp(avg) + mlp(mx))     # (B, C)
    return xf * scale[:, :, None, None]


if __name__ == "__main__":
    def run_case(B, C, H, W, reduction, dtype=jnp.float32, atol=1e-4, rtol=1e-4, **kwargs):
        Cr = C // reduction
        key = jax.random.PRNGKey(0)
        k1, k2, k3 = jax.random.split(key, 3)
        x = jax.random.normal(k1, (B, C, H, W), dtype=jnp.float32).astype(dtype)
        w1 = jax.random.normal(k2, (Cr, C), dtype=jnp.float32) / jnp.sqrt(C)
        w2 = jax.random.normal(k3, (C, Cr), dtype=jnp.float32) / jnp.sqrt(Cr)

        out = jax.block_until_ready(channel_attention_forward(x, w1, w2, **kwargs))
        ref = channel_attention_reference(x, w1, w2)
        assert out.shape == (B, C, H, W)
        assert out.dtype == x.dtype
        err = float(jnp.max(jnp.abs(out.astype(jnp.float32) - ref)))
        assert jnp.allclose(out.astype(jnp.float32), ref, atol=atol, rtol=rtol), err

    # 1) Fused single-pass path (typical small-HW SE block), f32 I/O.
    run_case(2, 64, 16, 16, 16)
    # 2) Tiled two-pass path with multiple spatial tiles and a ragged final
    #    tile (forced via tiny limits so the fallback is exercised too).
    run_case(2, 32, 18, 18, 8,
             fuse_slice_limit_bytes=0, block_target_bytes=32 * 1024)
    # 3) bf16 I/O path through the fused kernel (compute stays in f32 in-kernel).
    run_case(2, 64, 16, 16, 16, dtype=jnp.bfloat16, atol=5e-2, rtol=5e-2)

    print("KERNEL_OK")
</pallas_src>

<mosaic_0001>
module attributes {stable_mosaic.version = 11 : i64} {
  func.func @fused_kernel(%arg0: i32, %arg1: memref<4x64xf32, #tpu.memory_space<vmem>>, %arg2: memref<64x4xf32, #tpu.memory_space<vmem>>, %arg3: memref<2x64x256xf32, #tpu.memory_space<vmem>>, %arg4: memref<2x64x256xf32, #tpu.memory_space<vmem>>) attributes {dimension_semantics = [#tpu.dimension_semantics<parallel>], iteration_bounds = array<i64: 1>, scalar_prefetch = 0 : i64, scratch_operands = 0 : i64, tpu.core_type = #tpu.core_type<tc>, window_params = [{pipeline_mode = #tpu.pipeline_mode<synchronous>, transform_indices = @transform_0, window_bounds = array<i64: 4, 64>}, {pipeline_mode = #tpu.pipeline_mode<synchronous>, transform_indices = @transform_1, window_bounds = array<i64: 64, 4>}, {transform_indices = @transform_2, window_bounds = array<i64: 2, 64, 256>}, {transform_indices = @transform_3, window_bounds = array<i64: 2, 64, 256>}]} {
    %c0 = arith.constant 0 : index
    %c0_0 = arith.constant 0 : index
    %0 = vector.load %arg1[%c0, %c0_0] : memref<4x64xf32, #tpu.memory_space<vmem>>, vector<4x64xf32>
    %c0_1 = arith.constant 0 : index
    %c0_2 = arith.constant 0 : index
    %1 = vector.load %arg2[%c0_1, %c0_2] : memref<64x4xf32, #tpu.memory_space<vmem>>, vector<64x4xf32>
    %c0_3 = arith.constant 0 : index
    %c0_4 = arith.constant 0 : index
    %c0_5 = arith.constant 0 : index
    %2 = vector.load %arg3[%c0_3, %c0_4, %c0_5] : memref<2x64x256xf32, #tpu.memory_space<vmem>>, vector<1x64x256xf32>
    %3 = vector.shape_cast %2 : vector<1x64x256xf32> to vector<64x256xf32>
    %cst = arith.constant dense<0.000000e+00> : vector<64xf32>
    %4 = vector.multi_reduction <add>, %3, %cst [1] : vector<64x256xf32> to vector<64xf32>
    %5 = vector.shape_cast %4 : vector<64xf32> to vector<64x1xf32>
    %cst_6 = arith.constant 3.906250e-03 : f32
    %6 = vector.broadcast %cst_6 : f32 to vector<64x1xf32>
    %7 = arith.mulf %5, %6 : vector<64x1xf32>
    %cst_7 = arith.constant dense<0xFF800000> : vector<64xf32>
    %8 = vector.multi_reduction <maximumf>, %3, %cst_7 [1] : vector<64x256xf32> to vector<64xf32>
    %9 = vector.shape_cast %8 : vector<64xf32> to vector<64x1xf32>
    %10 = tpu.concatenate %7, %9 in 1 : vector<64x1xf32>, vector<64x1xf32> -> vector<64x2xf32>
    %cst_8 = arith.constant dense<0.000000e+00> : vector<4x2xf32>
    %11 = tpu.matmul %0, %10, %cst_8 {dimension_numbers = #tpu.dot_dimension_numbers<[1], [0], [0], [1], [0, 0, 1, 1], [], []>, precision = #tpu.contract_precision<fp32>} : vector<4x64xf32>, vector<64x2xf32>, vector<4x2xf32> -> vector<4x2xf32>
    %cst_9 = arith.constant 0.000000e+00 : f32
    %12 = vector.broadcast %cst_9 : f32 to vector<4x2xf32>
    %13 = arith.maximumf %11, %12 : vector<4x2xf32>
    %14 = vector.extract_strided_slice %13 {offsets = [0, 0], sizes = [4, 1], strides = [1, 1]} : vector<4x2xf32> to vector<4x1xf32>
    %15 = vector.extract_strided_slice %13 {offsets = [0, 1], sizes = [4, 1], strides = [1, 1]} : vector<4x2xf32> to vector<4x1xf32>
    %16 = arith.addf %14, %15 : vector<4x1xf32>
    %cst_10 = arith.constant dense<0.000000e+00> : vector<64x1xf32>
    %17 = tpu.matmul %1, %16, %cst_10 {dimension_numbers = #tpu.dot_dimension_numbers<[1], [0], [0], [1], [0, 0, 1, 1], [], []>, precision = #tpu.contract_precision<fp32>} : vector<64x4xf32>, vector<4x1xf32>, vector<64x1xf32> -> vector<64x1xf32>
    %cst_11 = arith.constant 0.000000e+00 : f32
    %18 = vector.broadcast %cst_11 : f32 to vector<64x1xf32>
    %19 = arith.subf %18, %17 : vector<64x1xf32>
    %20 = math.exp %19 : vector<64x1xf32>
    %cst_12 = arith.constant 1.000000e+00 : f32
    %21 = vector.broadcast %cst_12 : f32 to vector<64x1xf32>
    %22 = arith.addf %21, %20 : vector<64x1xf32>
    %cst_13 = arith.constant 1.000000e+00 : f32
    %23 = vector.broadcast %cst_13 : f32 to vector<64x1xf32>
    %24 = arith.divf %23, %22 : vector<64x1xf32>
    %25 = vector.broadcast %24 : vector<64x1xf32> to vector<64x256xf32>
    %26 = arith.mulf %3, %25 : vector<64x256xf32>
    %c0_14 = arith.constant 0 : index
    %c0_15 = arith.constant 0 : index
    %c0_16 = arith.constant 0 : index
    %27 = vector.load %arg4[%c0_14, %c0_15, %c0_16] : memref<2x64x256xf32, #tpu.memory_space<vmem>>, vector<1x64x256xf32>
    %28 = vector.shape_cast %27 : vector<1x64x256xf32> to vector<64x256xf32>
    %29 = vector.shape_cast %26 : vector<64x256xf32> to vector<1x64x256xf32>
    tpu.vector_store %arg4[%c0_14, %c0_15, %c0_16], %29 {strides = array<i32>} : memref<2x64x256xf32, #tpu.memory_space<vmem>>, vector<1x64x256xf32>,
    %c1 = arith.constant 1 : index
    %c0_17 = arith.constant 0 : index
    %c0_18 = arith.constant 0 : index
    %30 = vector.load %arg3[%c1, %c0_17, %c0_18] : memref<2x64x256xf32, #tpu.memory_space<vmem>>, vector<1x64x256xf32>
    %31 = vector.shape_cast %30 : vector<1x64x256xf32> to vector<64x256xf32>
    %cst_19 = arith.constant dense<0.000000e+00> : vector<64xf32>
    %32 = vector.multi_reduction <add>, %31, %cst_19 [1] : vector<64x256xf32> to vector<64xf32>
    %33 = vector.shape_cast %32 : vector<64xf32> to vector<64x1xf32>
    %cst_20 = arith.constant 3.906250e-03 : f32
    %34 = vector.broadcast %cst_20 : f32 to vector<64x1xf32>
    %35 = arith.mulf %33, %34 : vector<64x1xf32>
    %cst_21 = arith.constant dense<0xFF800000> : vector<64xf32>
    %36 = vector.multi_reduction <maximumf>, %31, %cst_21 [1] : vector<64x256xf32> to vector<64xf32>
    %37 = vector.shape_cast %36 : vector<64xf32> to vector<64x1xf32>
    %38 = tpu.concatenate %35, %37 in 1 : vector<64x1xf32>, vector<64x1xf32> -> vector<64x2xf32>
    %cst_22 = arith.constant dense<0.000000e+00> : vector<4x2xf32>
    %39 = tpu.matmul %0, %38, %cst_22 {dimension_numbers = #tpu.dot_dimension_numbers<[1], [0], [0], [1], [0, 0, 1, 1], [], []>, precision = #tpu.contract_precision<fp32>} : vector<4x64xf32>, vector<64x2xf32>, vector<4x2xf32> -> vector<4x2xf32>
    %cst_23 = arith.constant 0.000000e+00 : f32
    %40 = vector.broadcast %cst_23 : f32 to vector<4x2xf32>
    %41 = arith.maximumf %39, %40 : vector<4x2xf32>
    %42 = vector.extract_strided_slice %41 {offsets = [0, 0], sizes = [4, 1], strides = [1, 1]} : vector<4x2xf32> to vector<4x1xf32>
    %43 = vector.extract_strided_slice %41 {offsets = [0, 1], sizes = [4, 1], strides = [1, 1]} : vector<4x2xf32> to vector<4x1xf32>
    %44 = arith.addf %42, %43 : vector<4x1xf32>
    %cst_24 = arith.constant dense<0.000000e+00> : vector<64x1xf32>
    %45 = tpu.matmul %1, %44, %cst_24 {dimension_numbers = #tpu.dot_dimension_numbers<[1], [0], [0], [1], [0, 0, 1, 1], [], []>, precision = #tpu.contract_precision<fp32>} : vector<64x4xf32>, vector<4x1xf32>, vector<64x1xf32> -> vector<64x1xf32>
    %cst_25 = arith.constant 0.000000e+00 : f32
    %46 = vector.broadcast %cst_25 : f32 to vector<64x1xf32>
    %47 = arith.subf %46, %45 : vector<64x1xf32>
    %48 = math.exp %47 : vector<64x1xf32>
    %cst_26 = arith.constant 1.000000e+00 : f32
    %49 = vector.broadcast %cst_26 : f32 to vector<64x1xf32>
    %50 = arith.addf %49, %48 : vector<64x1xf32>
    %cst_27 = arith.constant 1.000000e+00 : f32
    %51 = vector.broadcast %cst_27 : f32 to vector<64x1xf32>
    %52 = arith.divf %51, %50 : vector<64x1xf32>
    %53 = vector.broadcast %52 : vector<64x1xf32> to vector<64x256xf32>
    %54 = arith.mulf %31, %53 : vector<64x256xf32>
    %c1_28 = arith.constant 1 : index
    %c0_29 = arith.constant 0 : index
    %c0_30 = arith.constant 0 : index
    %55 = vector.load %arg4[%c1_28, %c0_29, %c0_30] : memref<2x64x256xf32, #tpu.memory_space<vmem>>, vector<1x64x256xf32>
    %56 = vector.shape_cast %55 : vector<1x64x256xf32> to vector<64x256xf32>
    %57 = vector.shape_cast %54 : vector<64x256xf32> to vector<1x64x256xf32>
    tpu.vector_store %arg4[%c1_28, %c0_29, %c0_30], %57 {strides = array<i32>} : memref<2x64x256xf32, #tpu.memory_space<vmem>>, vector<1x64x256xf32>,
    return
  }
  func.func @transform_0(%arg0: i32) -> (i32, i32) {
    %c0_i32 = arith.constant 0 : i32
    %c0_i32_0 = arith.constant 0 : i32
    %c0_i32_1 = arith.constant 0 : i32
    return %c0_i32, %c0_i32_0 : i32, i32
  }
  func.func @transform_1(%arg0: i32) -> (i32, i32) {
    %c0_i32 = arith.constant 0 : i32
    %c0_i32_0 = arith.constant 0 : i32
    %c0_i32_1 = arith.constant 0 : i32
    return %c0_i32, %c0_i32_0 : i32, i32
  }
  func.func @transform_2(%arg0: i32) -> (i32, i32, i32) {
    %c0_i32 = arith.constant 0 : i32
    %c0_i32_0 = arith.constant 0 : i32
    %c0_i32_1 = arith.constant 0 : i32
    return %arg0, %c0_i32, %c0_i32_0 : i32, i32, i32
  }
  func.func @transform_3(%arg0: i32) -> (i32, i32, i32) {
    %c0_i32 = arith.constant 0 : i32
    %c0_i32_0 = arith.constant 0 : i32
    %c0_i32_1 = arith.constant 0 : i32
    return %arg0, %c0_i32, %c0_i32_0 : i32, i32, i32
  }
}

</mosaic_0001>

<bundles_post_ra>
// kernel: tpu_custom_call.1
= control target key start
LH: loop header
LB: loop body
LE: loop exit
PB: predicated region body
PF: predicated region fallthrough
CT: control target
= control target key end

     0   :  { %8 = vsyncpa [#allocation3], 0  ;;  %s4678_s0 = inlined_call_operand.vmem [shape: f32[4,64], index: 0, kind: input, shape index: {}]   ;;  %s4679_s1 = inlined_call_operand.vmem [shape: f32[64,4], index: 1, kind: input, shape index: {}]   ;;  %s4680_s2 = inlined_call_operand.hbm [shape: f32[2,64,256], index: 2, kind: input, shape index: {}]   ;;  %s4681_s3 = inlined_call_operand.hbm [shape: f32[2,64,256], index: 3, kind: output, shape index: {}]  }
   0x1   :  { %9 = vsyncpa [#allocation4], 0  ;;  %s4087_s12 = smov [#allocation2]   ;;  %s4039_s16 = scalar_lea.hbm %s4680_s2, 4096 }
   0x2   :  { %s19_s13 = sshll.u32 %s4087_s12, 4  ;;  %p4040_p0 = scmp.ne.s32.totalorder %s4680_s2, %s4039_s16  ;;  %s20_s13 = int_to_ptr.vmem [resolvable:$true] %s19_s13 }
   0x3   :  { %p4043_p1 = scmp.lt.u32.totalorder %s4039_s16, %s4680_s2 }
   0x5   :  { %p4045_p2 = pnand %p4043_p1, %p4040_p0 }
   0x7   :  { %4048 = shalt.err (!%p4045_p2)
}
   0x8   :  { %s4049_s21 = scalar_lea.vmem %s20_s13, 4096  ;;  %p4054_p4 = scmp.lt.s32.totalorder %s20_s13, %s20_s13 }
   0x9   :  { %p4050_p3 = scmp.ne.s32.totalorder %s20_s13, %s4049_s21  ;;  %p4055_p5 = scmp.lt.s32.totalorder %s4049_s21, %s4049_s21 }
   0xb   :  { %p4056_p6 = por %p4055_p5, %p4054_p4 }
   0xd   :  { %p4057_p7 = pnand %p4056_p6, %p4050_p3 }
   0xf   :  { %4060 = shalt.err (!%p4057_p7)
}
  0x10   :  { %s4088_s22 = smov 256   ;;  %s4089_s23 = smov 16  }
  0x11   :  { %25 = dma.hbm_to_vmem [thread:$0]  %s4680_s2, 4096, %s20_s13, [#allocation3], %s4088_s22, %s4088_s22, %s4089_s23  }
  0x12   :  { %4083 = dma.done.wait [#allocation3], 4096  }
  0x13   :  { %4084 = vsyncadd [#allocation3], 4294963200  ;;  %v38_v0 = vld [vmem:[#allocation2] sm:$0xff]  ;;  %v39_v1 = vld [vmem:[#allocation2 + $0x8] sm:$0xff]  ;;  %v4090_v32 = vmov 0.0|0.0   ;;  %vm4091_vm0 = vmmov 0  }
  0x14   :  { %v40_v2 = vld [vmem:[#allocation2 + $0x10] sm:$0xff]  ;;  %v86_v3 = vmax.f32 %v38_v0, %v39_v1  ;;  %v54_v4 = vadd.f32 %v39_v1, %v38_v0  ;;  %v41_v5 = vld [vmem:[#allocation2 + $0x18] sm:$0xff]  ;;  %v42_v10 = vld [vmem:[#allocation2 + $0x20] sm:$0xff]  ;;  %3686 = vmatprep.subr.bf16.mxu0 %v4090_v32  ;;  %v4092_v33 = vmov 0.0   ;;  %vm110_vm1 = vcmask 7168   ;;  %s4093_s28 = smov 127  }
  0x15   :  { %v89_v6 = vmax.f32 %v40_v2, %v41_v5  ;;  %v57_v7 = vadd.f32 %v41_v5, %v40_v2  ;;  %v44_v8 = vld [vmem:[#allocation2 + $0x30] sm:$0xff]  ;;  %v45_v9 = vld [vmem:[#allocation2 + $0x38] sm:$0xff]  ;;  %v43_v11 = vld [vmem:[#allocation2 + $0x28] sm:$0xff]  ;;  %3306 = vmatprep.mubr.msk.f32.mxu0 %vm4091_vm0, %v4092_v33  ;;  %vm119_vm2 = vcmask 523264   ;;  %vm666_vm3 = vcmask 31744  }
  0x16   :  { %87 = vmax.xlane.f32.xlu1 %v86_v3  ;;  %55 = vadd.xlane.f32.xlu0 %v54_v4  ;;  %v63_v12 = vadd.f32 %v45_v9, %v44_v8  ;;  %v60_v13 = vadd.f32 %v43_v11, %v42_v10  ;;  %v95_v14 = vmax.f32 %v44_v8, %v45_v9  ;;  %v48_v16 = vld [vmem:[#allocation2 + $0x50] sm:$0xff]  ;;  %v49_v17 = vld [vmem:[#allocation2 + $0x58] sm:$0xff]  ;;  %v46_v18 = vld [vmem:[#allocation2 + $0x40] sm:$0xff]  ;;  %vm691_vm4 = vcmask 1043456  }
  0x17   :  { %v92_v15 = vmax.f32 %v42_v10, %v43_v11  ;;  %v47_v19 = vld [vmem:[#allocation2 + $0x48] sm:$0xff]  ;;  %v69_v20 = vadd.f32 %v49_v17, %v48_v16  ;;  %v101_v22 = vmax.f32 %v48_v16, %v49_v17  ;;  %v52_v24 = vld [vmem:[#allocation2 + $0x70] sm:$0xff]  ;;  %v53_v25 = vld [vmem:[#allocation2 + $0x78] sm:$0xff] }
  0x18   :  { %v66_v21 = vadd.f32 %v47_v19, %v46_v18  ;;  %v98_v23 = vmax.f32 %v46_v18, %v47_v19  ;;  %v50_v26 = vld [vmem:[#allocation2 + $0x60] sm:$0xff]  ;;  %v51_v27 = vld [vmem:[#allocation2 + $0x68] sm:$0xff]  ;;  %v75_v28 = vadd.f32 %v53_v25, %v52_v24  ;;  %v107_v30 = vmax.f32 %v52_v24, %v53_v25 }
  0x19   :  { %v72_v29 = vadd.f32 %v51_v27, %v50_v26  ;;  %v104_v31 = vmax.f32 %v50_v26, %v51_v27  ;;  %v29_v49 = vld [vmem:[%s4678_s0] sm:$0xf] }
  0x1a   :  { %90 = vmax.xlane.f32.xlu1 %v89_v6  ;;  %58 = vadd.xlane.f32.xlu0 %v57_v7  ;;  %v121_v56 = vsel %vm119_vm2, %v29_v49, 0 }
  0x1b   :  { %v4147_v60 = vand.u32 4294901760, %v121_v56 }
  0x1d   :  { %v4158_v5 = vsub.f32 %v121_v56, %v4147_v60 }
  0x1e   :  { %64 = vadd.xlane.f32.xlu1 %v63_v12  ;;  %61 = vadd.xlane.f32.xlu0 %v60_v13 }
  0x22   :  { %96 = vmax.xlane.f32.xlu1 %v95_v14  ;;  %93 = vmax.xlane.f32.xlu0 %v92_v15  ;;  %v4169_v15 = vand.u32 4294901760, %v4158_v5 }
  0x24   :  { %v199_v27 = vsub.f32 %v4158_v5, %v4169_v15 }
  0x26   :  { %70 = vadd.xlane.f32.xlu1 %v69_v20  ;;  %67 = vadd.xlane.f32.xlu0 %v66_v21 }
  0x2a   :  { %102 = vmax.xlane.f32.xlu1 %v101_v22  ;;  %99 = vmax.xlane.f32.xlu0 %v98_v23 }
  0x2e   :  { %76 = vadd.xlane.f32.xlu1 %v75_v28  ;;  %73 = vadd.xlane.f32.xlu0 %v72_v29 }
  0x32   :  { %108 = vmax.xlane.f32.xlu1 %v107_v30  ;;  %105 = vmax.xlane.f32.xlu0 %v104_v31 }
  0xa3   :  { %v88_v34 = vpop.xlane.xlu1 %87  ;;  %v56_v35 = vpop.xlane.xlu0 %55 }
  0xa4   :  { %v78_v36 = vmul.f32 0.00390625, %v56_v35 }
  0xa6   :  { %v111_v39 = vsel %vm110_vm1, %v78_v36, %v88_v34 }
  0xa7   :  { %v91_v37 = vpop.xlane.xlu1 %90  ;;  %v59_v38 = vpop.xlane.xlu0 %58  ;;  %v124_v42 = vand.u32 4294901760, %v111_v39 }
  0xa8   :  { %v79_v40 = vmul.f32 0.00390625, %v59_v38 }
  0xa9   :  { %v4153_v2 = vsub.f32 %v111_v39, %v124_v42 }
  0xaa   :  { %v112_v41 = vsel %vm110_vm1, %v79_v40, %v91_v37 }
  0xab   :  { %v127_v43 = vand.u32 4294901760, %v112_v41  ;;  %v65_v44 = vpop.xlane.xlu1 %64  ;;  %v62_v45 = vpop.xlane.xlu0 %61  ;;  %v209_v14 = vand.u32 4294901760, %v4153_v2 }
  0xac   :  { %v81_v47 = vmul.f32 0.00390625, %v65_v44  ;;  %v80_v48 = vmul.f32 0.00390625, %v62_v45 }
  0xad   :  { %v4136_v46 = vpack.c.bf16 %v127_v43, %v124_v42  ;;  %v4149_v61 = vsub.f32 %v112_v41, %v127_v43  ;;  %v210_v28 = vsub.f32 %v4153_v2, %v209_v14  ;;  %v4203_v41 = vand.u32 4294901760, %v199_v27 }
  0xaf   :  { %v97_v50 = vpop.xlane.xlu1 %96  ;;  %3688 = vmatpush3.bf16.msra.mxu0 %v4136_v46  ;;  %v94_v51 = vpop.xlane.xlu0 %93  ;;  %v216_v6 = vand.u32 4294901760, %v4149_v61  ;;  %v211_v42 = vand.u32 4294901760, %v210_v28 }
  0xb0   :  { %v114_v52 = vsel %vm110_vm1, %v81_v47, %v97_v50  ;;  %v113_v53 = vsel %vm110_vm1, %v80_v48, %v94_v51  ;;  %3689 = vmatprep.subr.bf16.mxu0 %v4090_v32 }
  0xb1   :  { %v133_v54 = vand.u32 4294901760, %v114_v52  ;;  %v130_v55 = vand.u32 4294901760, %v113_v53  ;;  %v217_v17 = vsub.f32 %v4149_v61, %v216_v6 }
  0xb3   :  { %v71_v57 = vpop.xlane.xlu1 %70  ;;  %v68_v58 = vpop.xlane.xlu0 %67  ;;  %v4145_v59 = vpack.c.bf16 %v133_v54, %v130_v55  ;;  %v4161_v7 = vsub.f32 %v114_v52, %v133_v54  ;;  %v4163_v10 = vsub.f32 %v113_v53, %v130_v55  ;;  %v218_v36 = vand.u32 4294901760, %v217_v17  ;;  %v1569_v17 = vld [vmem:[#allocation2 + $0xb0] sm:$0xff] }
  0xb4   :  { %v83_v62 = vmul.f32 0.00390625, %v71_v57  ;;  %v82_v63 = vmul.f32 0.00390625, %v68_v58 }
  0xb5   :  { %3691 = vmatpush3.bf16.msra.mxu0 %v4145_v59  ;;  %v230_v16 = vand.u32 4294901760, %v4161_v7  ;;  %v223_v18 = vand.u32 4294901760, %v4163_v10  ;;  %v3699_v45 = vpack.c.bf16 %v218_v36, %v211_v42 }
  0xb6   :  { %3692 = vmatprep.subr.bf16.mxu0 %v4090_v32 }
  0xb7   :  { %v103_v0 = vpop.xlane.xlu1 %102  ;;  %v100_v1 = vpop.xlane.xlu0 %99  ;;  %v231_v31 = vsub.f32 %v4161_v7, %v230_v16  ;;  %v224_v34 = vsub.f32 %v4163_v10, %v223_v18 }
  0xb8   :  { %v116_v3 = vsel %vm110_vm1, %v83_v62, %v103_v0  ;;  %v115_v4 = vsel %vm110_vm1, %v82_v63, %v100_v1  ;;  %v3711_v63 = vpack.c.bf16 %v4149_v61, %v4153_v2  ;;  %v3714_v0 = vpack.c.bf16 %v4161_v7, %v4163_v10  ;;  %v1564_v7 = vld [vmem:[#allocation2 + $0x88] sm:$0xff]  ;;  %v1566_v10 = vld [vmem:[#allocation2 + $0x98] sm:$0xff] }
  0xb9   :  { %v139_v8 = vand.u32 4294901760, %v116_v3  ;;  %v136_v9 = vand.u32 4294901760, %v115_v4  ;;  %v232_v43 = vand.u32 4294901760, %v231_v31  ;;  %v225_v44 = vand.u32 4294901760, %v224_v34  ;;  %v1577_v34 = vld [vmem:[#allocation2 + $0xf0] sm:$0xff] }
  0xbb   :  { %v77_v11 = vpop.xlane.xlu1 %76  ;;  %v74_v12 = vpop.xlane.xlu0 %73  ;;  %v4165_v13 = vpack.c.bf16 %v139_v8, %v136_v9  ;;  %v4177_v19 = vsub.f32 %v116_v3, %v139_v8  ;;  %v4180_v22 = vsub.f32 %v115_v4, %v136_v9  ;;  %v3702_v51 = vpack.c.bf16 %v232_v43, %v225_v44  ;;  %v1565_v9 = vld [vmem:[#allocation2 + $0x90] sm:$0xff] }
  0xbc   :  { %v85_v20 = vmul.f32 0.00390625, %v77_v11  ;;  %v84_v21 = vmul.f32 0.00390625, %v74_v12  ;;  %v3735_v4 = vpack.c.bf16 %v216_v6, %v209_v14  ;;  %v3738_v8 = vpack.c.bf16 %v230_v16, %v223_v18  ;;  %v1563_v6 = vld [vmem:[#allocation2 + $0x80] sm:$0xff]  ;;  %v1568_v16 = vld [vmem:[#allocation2 + $0xa8] sm:$0xff]  ;;  %v1570_v18 = vld [vmem:[#allocation2 + $0xb8] sm:$0xff] }
  0xbd   :  { %3694 = vmatpush3.bf16.msra.mxu0 %v4165_v13  ;;  %v244_v35 = vand.u32 4294901760, %v4177_v19  ;;  %v237_v37 = vand.u32 4294901760, %v4180_v22  ;;  %v3717_v1 = vpack.c.bf16 %v4177_v19, %v4180_v22  ;;  %v1582_v11 = vadd.f32 %v1566_v10, %v1565_v9  ;;  %v1567_v14 = vld [vmem:[#allocation2 + $0xa0] sm:$0xff] }
  0xbe   :  { %3695 = vmatprep.subr.bf16.mxu0 %v4090_v32  ;;  %v1611_v12 = vmax.f32 %v1563_v6, %v1564_v7 }
  0xbf   :  { %v109_v23 = vpop.xlane.xlu1 %108  ;;  %v106_v24 = vpop.xlane.xlu0 %105  ;;  %v245_v47 = vsub.f32 %v4177_v19, %v244_v35  ;;  %v238_v48 = vsub.f32 %v4180_v22, %v237_v37  ;;  %v3741_v61 = vpack.c.bf16 %v244_v35, %v237_v37  ;;  %v1588_v19 = vadd.f32 %v1570_v18, %v1569_v17  ;;  %v1572_v22 = vld [vmem:[#allocation2 + $0xc8] sm:$0xff]  ;;  %v1578_v35 = vld [vmem:[#allocation2 + $0xf8] sm:$0xff] }
  0xc0   :  { %v118_v25 = vsel %vm110_vm1, %v85_v20, %v109_v23  ;;  %v117_v26 = vsel %vm110_vm1, %v84_v21, %v106_v24  ;;  %v1620_v20 = vmax.f32 %v1569_v17, %v1570_v18  ;;  %v1571_v21 = vld [vmem:[#allocation2 + $0xc0] sm:$0xff]  ;;  %v1573_v24 = vld [vmem:[#allocation2 + $0xd0] sm:$0xff]  ;;  %v1600_v36 = vadd.f32 %v1578_v35, %v1577_v34 }
  0xc1   :  { %v145_v29 = vand.u32 4294901760, %v118_v25  ;;  %v142_v30 = vand.u32 4294901760, %v117_v26  ;;  %v246_v52 = vand.u32 4294901760, %v245_v47  ;;  %v239_v53 = vand.u32 4294901760, %v238_v48 }
  0xc2   :  { %v1591_v23 = vadd.f32 %v1572_v22, %v1571_v21  ;;  %v1623_v27 = vmax.f32 %v1571_v21, %v1572_v22 }
  0xc3   :  { %v4197_v38 = vsub.f32 %v118_v25, %v145_v29  ;;  %v4199_v39 = vsub.f32 %v117_v26, %v142_v30  ;;  %v4201_v40 = vpack.c.bf16 %v145_v29, %v142_v30  ;;  %v3705_v58 = vpack.c.bf16 %v246_v52, %v239_v53  ;;  %v1574_v25 = vld [vmem:[#allocation2 + $0xd8] sm:$0xff]  ;;  %v1575_v29 = vld [vmem:[#allocation2 + $0xe0] sm:$0xff]  ;;  %v1576_v30 = vld [vmem:[#allocation2 + $0xe8] sm:$0xff] }
  0xc4   :  { %v1594_v26 = vadd.f32 %v1574_v25, %v1573_v24  ;;  %v1626_v28 = vmax.f32 %v1573_v24, %v1574_v25  ;;  %v1597_v31 = vadd.f32 %v1576_v30, %v1575_v29  ;;  %v1629_v37 = vmax.f32 %v1575_v29, %v1576_v30  ;;  %v31_v52 = vld [vmem:[%s4679_s1 + $0x8] sm:$0xff]  ;;  %v32_v53 = vld [vmem:[%s4679_s1 + $0x10] sm:$0xff] }
  0xc5   :  { %3697 = vmatpush3.bf16.msra.mxu0 %v4201_v40  ;;  %v258_v49 = vand.u32 4294901760, %v4197_v38  ;;  %v251_v50 = vand.u32 4294901760, %v4199_v39  ;;  %v3720_v3 = vpack.c.bf16 %v4197_v38, %v4199_v39 }
  0xc6   :  { %3698 = vmatprep.subr.bf16.mxu0 %v4090_v32 }
  0xc7   :  { %v259_v54 = vsub.f32 %v4197_v38, %v258_v49  ;;  %v252_v55 = vsub.f32 %v4199_v39, %v251_v50  ;;  %v3744_v2 = vpack.c.bf16 %v258_v49, %v251_v50  ;;  %v30_v38 = vld [vmem:[%s4679_s1] sm:$0xff]  ;;  %v1617_v50 = vmax.f32 %v1567_v14, %v1568_v16 }
  0xc8   :  { %3307 = vmatmul.mubr.f32.vlgmr.msra.gmra.mrb[0].mxu0 %v4203_v41  ;;  %v668_v39 = vsel %vm666_vm3, %v30_v38, 0 }
  0xc9   :  { %3700 = vmatpush3.bf16.msra.mxu0 %v3699_v45  ;;  %3325 = vmatprep.mubr.msk.f32.mxu0 %vm4091_vm0, %v4092_v33  ;;  %v260_v56 = vand.u32 4294901760, %v259_v54  ;;  %v253_v57 = vand.u32 4294901760, %v252_v55  ;;  %v671_v54 = vsel %vm666_vm3, %v31_v52, 0  ;;  %v674_v55 = vsel %vm666_vm3, %v32_v53, 0 }
  0xca   :  { %3701 = vmatprep.subr.bf16.mxu0 %v4090_v32 }
  0xcb   :  { %v3708_v62 = vpack.c.bf16 %v260_v56, %v253_v57  ;;  %v33_v56 = vld [vmem:[%s4679_s1 + $0x18] sm:$0xff]  ;;  %v4306_v57 = vand.u32 4294901760, %v671_v54 }
  0xcd   :  { %3703 = vmatpush3.bf16.msra.mxu0 %v3702_v51  ;;  %v1632_v51 = vmax.f32 %v1577_v34, %v1578_v35 }
  0xce   :  { %3704 = vmatprep.subr.bf16.mxu0 %v4090_v32 }
  0xd1   :  { %3706 = vmatpush3.bf16.msra.mxu0 %v3705_v58  ;;  %v34_v58 = vld [vmem:[%s4679_s1 + $0x20] sm:$0xff] }
  0xd2   :  { %3707 = vmatprep.subr.bf16.mxu0 %v4090_v32 }
  0xd5   :  { %3709 = vmatpush3.bf16.msra.mxu0 %v3708_v62  ;;  %v4311_v62 = vand.u32 4294901760, %v674_v55 }
  0xd6   :  { %3710 = vmatprep.subr.bf16.mxu0 %v4090_v32 }
  0xd8   :  { %3326 = vmatmul.mubr.f32.vlgmr.msra.gmra.mrb[0].mxu0 %v4147_v60 }
  0xd9   :  { %3712 = vmatpush3.bf16.msra.mxu0 %v3711_v63  ;;  %3344 = vmatprep.mubr.msk.f32.mxu0 %vm4091_vm0, %v4092_v33  ;;  %v677_v63 = vsel %vm666_vm3, %v33_v56, 0 }
  0xda   :  { %3713 = vmatprep.subr.bf16.mxu0 %v4090_v32 }
  0xdd   :  { %3715 = vmatpush3.bf16.msra.mxu0 %v3714_v0  ;;  %v680_v0 = vsel %vm666_vm3, %v34_v58, 0 }
  0xde   :  { %3716 = vmatprep.subr.bf16.mxu0 %v4090_v32 }
  0xe1   :  { %3718 = vmatpush3.bf16.msra.mxu0 %v3717_v1  ;;  %v35_v1 = vld [vmem:[%s4679_s1 + $0x28] sm:$0xff] }
  0xe2   :  { %3719 = vmatprep.subr.bf16.mxu0 %v4090_v32 }
  0xe5   :  { %3721 = vmatpush3.bf16.msra.mxu0 %v3720_v3  ;;  %v4319_v3 = vsub.f32 %v671_v54, %v4306_v57 }
  0xe6   :  { %3722 = vmatprep.subr.bf16.mxu0 %v4090_v32 }
  0xe8   :  { %3345 = vmatmul.mubr.f32.vlgmr.msra.gmra.mrb[0].mxu0 %v4158_v5 }
  0xe9   :  { %3724 = vmatpush3.bf16.msra.mxu0 %v4136_v46  ;;  %3363 = vmatprep.mubr.msk.f32.mxu0 %vm4091_vm0, %v4092_v33 }
  0xea   :  { %3725 = vmatprep.subr.bf16.mxu0 %v4090_v32 }
  0xed   :  { %3727 = vmatpush3.bf16.msra.mxu0 %v4145_v59 }
  0xee   :  { %3728 = vmatprep.subr.bf16.mxu0 %v4090_v32 }
  0xf1   :  { %3730 = vmatpush3.bf16.msra.mxu0 %v4165_v13 }
  0xf2   :  { %3731 = vmatprep.subr.bf16.mxu0 %v4090_v32 }
  0xf5   :  { %3733 = vmatpush3.bf16.msra.mxu0 %v4201_v40 }
  0xf6   :  { %3734 = vmatprep.subr.bf16.mxu0 %v4090_v32 }
  0xf8   :  { %3364 = vmatmul.mubr.f32.vlgmr.msra.gmra.mrb[0].mxu0 %v4169_v15 }
  0xf9   :  { %3736 = vmatpush3.bf16.msra.mxu0 %v3735_v4  ;;  %3382 = vmatprep.mubr.msk.f32.mxu0 %vm4091_vm0, %v4092_v33  ;;  %v36_v4 = vld [vmem:[%s4679_s1 + $0x30] sm:$0xff] }
  0xfa   :  { %3737 = vmatprep.subr.bf16.mxu0 %v4090_v32 }
  0xfd   :  { %3739 = vmatpush3.bf16.msra.mxu0 %v3738_v8  ;;  %v4324_v8 = vand.u32 4294901760, %v677_v63 }
  0xfe   :  { %3740 = vmatprep.subr.bf16.mxu0 %v4090_v32 }
 0x101   :  { %3742 = vmatpush3.bf16.msra.mxu0 %v3741_v61  ;;  %v4327_v61 = vsub.f32 %v674_v55, %v4311_v62 }
 0x102   :  { %3743 = vmatprep.subr.bf16.mxu0 %v4090_v32 }
 0x105   :  { %3745 = vmatpush3.bf16.msra.mxu0 %v3744_v2  ;;  %v4329_v2 = vand.u32 4294901760, %v680_v0 }
 0x106   :  { %3746 = vmatprep.subr.bf16.mxu0 %v4090_v32 }
 0x108   :  { %3383 = vmatmul.mubr.f32.vlgmr.msra.gmra.mrb[0].mxu0 %v4147_v60 }
 0x109   :  { %3748 = vmatpush3.bf16.msra.mxu0 %v4136_v46  ;;  %3401 = vmatprep.mubr.msk.f32.mxu0 %vm4091_vm0, %v4092_v33  ;;  %v1579_v46 = vadd.f32 %v1564_v7, %v1563_v6  ;;  %v683_v6 = vsel %vm666_vm3, %v35_v1, 0  ;;  %v686_v7 = vsel %vm666_vm3, %v36_v4, 0 }
 0x10a   :  { %3749 = vmatprep.subr.bf16.mxu0 %v4090_v32 }
 0x10b   :  { %1580 = vadd.xlane.f32.xlu1 %v1579_v46  ;;  %v37_v46 = vld [vmem:[%s4679_s1 + $0x38] sm:$0xff]  ;;  %s4095_s1 = smov [#allocation5]  }
 0x10c   :  { %s3062_s16 = sshll.u32 %s4095_s1, 4  ;;  %s3063_s16 = int_to_ptr.vmem [resolvable:$true] %s3062_s16 }
 0x10d   :  { %3751 = vmatpush3.bf16.msra.mxu0 %v4145_v59  ;;  %v1614_v59 = vmax.f32 %v1565_v9, %v1566_v10  ;;  %v4337_v9 = vand.u32 4294901760, %v4319_v3  ;;  %v4340_v10 = vsub.f32 %v677_v63, %v4324_v8  ;;  %s4061_s17 = scalar_lea.vmem %s3063_s16, 4096  ;;  %p4066_p9 = scmp.lt.s32.totalorder %s3063_s16, %s3063_s16 }
 0x10e   :  { %3752 = vmatprep.subr.bf16.mxu0 %v4090_v32  ;;  %p4062_p8 = scmp.ne.s32.totalorder %s3063_s16, %s4061_s17  ;;  %p4067_p10 = scmp.lt.s32.totalorder %s4061_s17, %s4061_s17 }
 0x10f   :  { %1583 = vadd.xlane.f32.xlu1 %v1582_v11  ;;  %v4342_v11 = vand.u32 4294901760, %v683_v6  ;;  %v4356_v18 = vand.u32 4294901760, %v4340_v10 }
 0x110   :  { %p4068_p11 = por %p4067_p10, %p4066_p9 }
 0x111   :  { %3754 = vmatpush3.bf16.msra.mxu0 %v4165_v13  ;;  %v1585_v13 = vadd.f32 %v1568_v16, %v1567_v14  ;;  %v4350_v14 = vand.u32 4294901760, %v686_v7  ;;  %v689_v16 = vsel %vm666_vm3, %v37_v46, 0 }
 0x112   :  { %3755 = vmatprep.subr.bf16.mxu0 %v4090_v32  ;;  %p4069_p12 = pnand %p4068_p11, %p4062_p8 }
 0x113   :  { %1612 = vmax.xlane.f32.xlu1 %v1611_v12  ;;  %v4345_v12 = vand.u32 4294901760, %v4327_v61  ;;  %v4369_v24 = vsub.f32 %v686_v7, %v4350_v14 }
 0x115   :  { %3757 = vmatpush3.bf16.msra.mxu0 %v4201_v40  ;;  %v4284_v40 = vand.u32 4294901760, %v668_v39  ;;  %v784_v22 = vsub.f32 %v4327_v61, %v4345_v12  ;;  %v4389_v35 = vand.u32 4294901760, %v4369_v24 }
 0x117   :  { %1615 = vmax.xlane.f32.xlu1 %v1614_v59  ;;  %v4287_v42 = vsub.f32 %v668_v39, %v4284_v40  ;;  %v4348_v59 = vsub.f32 %v680_v0, %v4329_v2 }
 0x118   :  { %3402 = vmatmul.mubr.f32.vlgmr.msra.gmra.mrb[0].mxu0 %v4147_v60 }
 0x119   :  { %v4290_v43 = vand.u32 4294901760, %v4287_v42 }
 0x11b   :  { %1586 = vadd.xlane.f32.xlu1 %v1585_v13  ;;  %v764_v44 = vsub.f32 %v4287_v42, %v4290_v43  ;;  %v774_v13 = vsub.f32 %v4319_v3, %v4337_v9 }
 0x11d   :  { %v765_v45 = vand.u32 4294901760, %v764_v44 }
 0x11f   :  { %1589 = vadd.xlane.f32.xlu1 %v1588_v19  ;;  %3406 = vmatprep.mubr.f32.mxu1 %v765_v45  ;;  %v4359_v19 = vsub.f32 %v683_v6, %v4342_v11 }
 0x120   :  { %3604 = vmatprep.mubr.f32.mxu0 %v765_v45 }
 0x121   :  { %v4379_v29 = vand.u32 4294901760, %v4359_v19 }
 0x123   :  { %1621 = vmax.xlane.f32.xlu1 %v1620_v20  ;;  %v4361_v20 = vand.u32 4294901760, %v689_v16  ;;  %v814_v39 = vsub.f32 %v4359_v19, %v4379_v29 }
 0x125   :  { %v4382_v30 = vsub.f32 %v689_v16, %v4361_v20 }
 0x127   :  { %1592 = vadd.xlane.f32.xlu1 %v1591_v23  ;;  %v4366_v23 = vand.u32 4294901760, %v4348_v59  ;;  %v4400_v44 = vand.u32 4294901760, %v4382_v30 }
 0x129   :  { %v804_v34 = vsub.f32 %v4348_v59, %v4366_v23 }
 0x12b   :  { %1595 = vadd.xlane.f32.xlu1 %v1594_v26  ;;  %v4372_v26 = vand.u32 4294901760, %v774_v13  ;;  %v4403_v45 = vand.u32 4294901760, %v804_v34 }
 0x12f   :  { %1624 = vmax.xlane.f32.xlu1 %v1623_v27 }
 0x133   :  { %1627 = vmax.xlane.f32.xlu1 %v1626_v28  ;;  %v794_v28 = vsub.f32 %v4340_v10, %v4356_v18 }
 0x137   :  { %1598 = vadd.xlane.f32.xlu1 %v1597_v31  ;;  %v4384_v31 = vand.u32 4294901760, %v784_v22 }
 0x13b   :  { %1601 = vadd.xlane.f32.xlu1 %v1600_v36 }
 0x13f   :  { %1630 = vmax.xlane.f32.xlu1 %v1629_v37  ;;  %v4395_v37 = vand.u32 4294901760, %v794_v28 }
 0x198   :  { %v1581_v53 = vpop.xlane.xlu1 %1580 }
 0x199   :  { %v1603_v16 = vmul.f32 0.00390625, %v1581_v53 }
 0x19c   :  { %v1584_v55 = vpop.xlane.xlu1 %1583 }
 0x19d   :  { %v1604_v13 = vmul.f32 0.00390625, %v1584_v55 }
 0x1a0   :  { %v1613_v56 = vpop.xlane.xlu1 %1612 }
 0x1a4   :  { %v1616_v58 = vpop.xlane.xlu1 %1615 }
 0x1a5   :  { %v1636_v22 = vsel %vm110_vm1, %v1604_v13, %v1616_v58 }
 0x1a8   :  { %v1587_v63 = vpop.xlane.xlu1 %1586 }
 0x1a9   :  { %v1605_v28 = vmul.f32 0.00390625, %v1587_v63 }
 0x1ac   :  { %v1590_v0 = vpop.xlane.xlu1 %1589 }
 0x1b0   :  { %v1622_v1 = vpop.xlane.xlu1 %1621 }
 0x1b4   :  { %v1593_v4 = vpop.xlane.xlu1 %1592 }
 0x1b8   :  { %v1596_v6 = vpop.xlane.xlu1 %1595 }
 0x1bc   :  { %v1625_v7 = vpop.xlane.xlu1 %1624 }
 0x1c0   :  { %v1628_v46 = vpop.xlane.xlu1 %1627 }
 0x1eb   :  { %v656_v47 = vpop.f32.mrb[0].mxu0 }
 0x1ec   :  { %v660_v48 = vmax.f32 %v656_v47, 0.0  ;;  %v3403_v49 = vpop.f32.mrb[1].mxu0  ;;  %v824_v47 = vsub.f32 %v4369_v24, %v4389_v35 }
 0x1ee   :  { %662 = vrot.lane.b32.xlu0 %v660_v48, %s4093_s28  ;;  %v4413_v52 = vand.u32 4294901760, %v824_v47  ;;  %v1608_v47 = vmul.f32 0.00390625, %v1596_v6 }
 0x20d   :  { %1618 = vmax.xlane.f32.xlu0 %v1617_v50  ;;  %v4408_v50 = vand.u32 4294901760, %v814_v39  ;;  %v1607_v39 = vmul.f32 0.00390625, %v1593_v4 }
 0x20f   :  { %v1639_v63 = vsel %vm110_vm1, %v1607_v39, %v1625_v7 }
 0x211   :  { %1633 = vmax.xlane.f32.xlu0 %v1632_v51  ;;  %v834_v51 = vsub.f32 %v4382_v30, %v4400_v44 }
 0x213   :  { %v4416_v54 = vand.u32 4294901760, %v834_v51 }
 0x260   :  { %v663_v17 = vpop.permute.xlu0 %662 }
 0x261   :  { %v665_v21 = vadd.f32 %v663_v17, %v660_v48  ;;  %v1599_v17 = vpop.xlane.xlu1 %1598 }
 0x263   :  { %v693_v25 = vsel %vm691_vm4, %v665_v21, 0  ;;  %v1635_v21 = vsel %vm110_vm1, %v1603_v16, %v1613_v56 }
 0x264   :  { %v4374_v27 = vand.u32 4294901760, %v693_v25 }
 0x266   :  { %v843_v36 = vsub.f32 %v693_v25, %v4374_v27  ;;  %3404 = vmatprep.subr.mxu1 %v4374_v27  ;;  %v1606_v25 = vmul.f32 0.00390625, %v1590_v0  ;;  %v1640_v0 = vsel %vm110_vm1, %v1608_v47, %v1628_v46 }
 0x267   :  { %3405 = vmatpush3.msra.mxu1 %v4374_v27  ;;  %v1659_v7 = vand.u32 4294901760, %v1640_v0 }
 0x268   :  { %3407 = vmatmul.mubr.f32.vlgmr.msra.gmra.mrb[0].mxu1 %v4372_v26  ;;  %v844_v38 = vand.u32 4294901760, %v843_v36 }
 0x269   :  { %3409 = vmatprep.mubr.f32.mxu1 %v4384_v31  ;;  %v4496_v47 = vsub.f32 %v1640_v0, %v1659_v7 }
 0x26a   :  { %v845_v48 = vsub.f32 %v843_v36, %v844_v38 }
 0x26c   :  { %3410 = vmatmul.mubr.f32.gmra.mrb[2].mxu1 %v4395_v37  ;;  %v846_v49 = vand.u32 4294901760, %v845_v48  ;;  %v1602_v48 = vpop.xlane.xlu1 %1601 }
 0x26d   :  { %3412 = vmatprep.mubr.f32.mxu1 %v4403_v45  ;;  %v1610_v4 = vmul.f32 0.00390625, %v1602_v48 }
 0x26e   :  { %3418 = vmatprep.subr.mxu1 %v846_v49 }
 0x26f   :  { %3419 = vmatpush3.msra.mxu1 %v846_v49 }
 0x270   :  { %3413 = vmatmul.mubr.f32.gmra.mrb[4].mxu1 %v4408_v50  ;;  %3432 = vmatprep.subr.mxu1 %v843_v36  ;;  %v1631_v16 = vpop.xlane.xlu1 %1630 }
 0x271   :  { %3415 = vmatprep.mubr.f32.mxu1 %v4413_v52 }
 0x274   :  { %3416 = vmatmul.mubr.f32.gmra.mrb[6].mxu1 %v4416_v54 }
 0x275   :  { %3420 = vmatprep.mubr.f32.mxu1 %v4284_v40 }
 0x278   :  { %3421 = vmatmul.mubr.f32.vlgmr.msra.gmra.mrb[0].mxu1 %v4306_v57 }
 0x279   :  { %3433 = vmatpush3.msra.mxu1 %v843_v36  ;;  %3423 = vmatprep.mubr.f32.mxu1 %v4311_v62  ;;  %v1647_v36 = vand.u32 4294901760, %v1636_v22 }
 0x27a   :  { %3446 = vmatprep.subr.mxu1 %v4374_v27 }
 0x27b   :  { %v4464_v53 = vsub.f32 %v1636_v22, %v1647_v36 }
 0x27c   :  { %3424 = vmatmul.mubr.f32.gmra.mrb[2].mxu1 %v4324_v8 }
 0x27d   :  { %3426 = vmatprep.mubr.f32.mxu1 %v4329_v2 }
 0x280   :  { %3427 = vmatmul.mubr.f32.gmra.mrb[4].mxu1 %v4342_v11 }
 0x281   :  { %3429 = vmatprep.mubr.f32.mxu1 %v4350_v14 }
 0x284   :  { %3430 = vmatmul.mubr.f32.gmra.mrb[6].mxu1 %v4361_v20 }
 0x285   :  { %3434 = vmatprep.mubr.f32.mxu1 %v4287_v42 }
 0x288   :  { %3435 = vmatmul.mubr.f32.vlgmr.msra.gmra.mrb[0].mxu1 %v4319_v3 }
 0x289   :  { %3447 = vmatpush3.msra.mxu1 %v4374_v27  ;;  %3437 = vmatprep.mubr.f32.mxu1 %v4327_v61 }
 0x28a   :  { %3460 = vmatprep.subr.mxu1 %v844_v38 }
 0x28c   :  { %3438 = vmatmul.mubr.f32.gmra.mrb[2].mxu1 %v4340_v10 }
 0x28d   :  { %3440 = vmatprep.mubr.f32.mxu1 %v4348_v59 }
 0x290   :  { %3441 = vmatmul.mubr.f32.gmra.mrb[4].mxu1 %v4359_v19 }
 0x291   :  { %3443 = vmatprep.mubr.f32.mxu1 %v4369_v24 }
 0x294   :  { %3444 = vmatmul.mubr.f32.gmra.mrb[6].mxu1 %v4382_v30 }
 0x295   :  { %3448 = vmatprep.mubr.f32.mxu1 %v4290_v43 }
 0x298   :  { %3449 = vmatmul.mubr.f32.vlgmr.msra.gmra.mrb[0].mxu1 %v4337_v9 }
 0x299   :  { %3461 = vmatpush3.msra.mxu1 %v844_v38  ;;  %3451 = vmatprep.mubr.f32.mxu1 %v4345_v12  ;;  %v1638_v38 = vsel %vm110_vm1, %v1606_v25, %v1622_v1  ;;  %v1609_v1 = vmul.f32 0.00390625, %v1599_v17  ;;  %v1656_v25 = vand.u32 4294901760, %v1639_v63 }
 0x29a   :  { %3474 = vmatprep.subr.mxu1 %v4374_v27  ;;  %v1619_v34 = vpop.xlane.xlu0 %1618  ;;  %v1653_v55 = vand.u32 4294901760, %v1638_v38 }
 0x29b   :  { %v1637_v49 = vsel %vm110_vm1, %v1605_v28, %v1619_v34  ;;  %v1641_v28 = vsel %vm110_vm1, %v1609_v1, %v1631_v16  ;;  %v4494_v39 = vsub.f32 %v1639_v63, %v1656_v25  ;;  %v4685_v16 = vand.u32 4294901760, %v4496_v47 }
 0x29c   :  { %3452 = vmatmul.mubr.f32.gmra.mrb[2].mxu1 %v4356_v18  ;;  %v1650_v58 = vand.u32 4294901760, %v1637_v49  ;;  %v4475_v22 = vsub.f32 %v1638_v38, %v1653_v55 }
 0x29d   :  { %3454 = vmatprep.mubr.f32.mxu1 %v4366_v23  ;;  %v4684_v0 = vand.u32 4294901760, %v4494_v39 }
 0x29e   :  { %v1634_v13 = vpop.xlane.xlu0 %1633  ;;  %v4478_v46 = vpack.c.bf16 %v1653_v55, %v1650_v58  ;;  %v4480_v17 = vsub.f32 %v1637_v49, %v1650_v58  ;;  %v4682_v38 = vand.u32 4294901760, %v4475_v22  ;;  %v4500_v49 = vpack.c.bf16 %v1659_v7, %v1656_v25 }
 0x29f   :  { %v1662_v55 = vand.u32 4294901760, %v1641_v28 }
 0x2a0   :  { %3455 = vmatmul.mubr.f32.gmra.mrb[4].mxu1 %v4379_v29  ;;  %v4683_v48 = vand.u32 4294901760, %v4480_v17  ;;  %v1751_v63 = vsub.f32 %v4475_v22, %v4682_v38  ;;  %v1758_v38 = vsub.f32 %v4494_v39, %v4684_v0 }
 0x2a1   :  { %3457 = vmatprep.mubr.f32.mxu1 %v4389_v35  ;;  %v4514_v25 = vsub.f32 %v1641_v28, %v1662_v55 }
 0x2a4   :  { %3458 = vmatmul.mubr.f32.gmra.mrb[6].mxu1 %v4400_v44 }
 0x2a5   :  { %3462 = vmatprep.mubr.f32.mxu1 %v4284_v40 }
 0x2a8   :  { %3463 = vmatmul.mubr.f32.vlgmr.msra.gmra.mrb[0].mxu1 %v4306_v57 }
 0x2a9   :  { %3475 = vmatpush3.msra.mxu1 %v4374_v27  ;;  %3465 = vmatprep.mubr.f32.mxu1 %v4311_v62  ;;  %v1644_v27 = vand.u32 4294901760, %v1635_v21 }
 0x2aa   :  { %3758 = vmatprep.subr.bf16.mxu1 %v4090_v32 }
 0x2ab   :  { %v4461_v51 = vsub.f32 %v1635_v21, %v1644_v27  ;;  %v4466_v56 = vpack.c.bf16 %v1647_v36, %v1644_v27  ;;  %v4686_v21 = vand.u32 4294901760, %v4464_v53  ;;  %v1642_v27 = vsel %vm110_vm1, %v1610_v4, %v1634_v13 }
 0x2ac   :  { %3466 = vmatmul.mubr.f32.gmra.mrb[2].mxu1 %v4324_v8  ;;  %v1665_v58 = vand.u32 4294901760, %v1642_v27  ;;  %v1744_v13 = vsub.f32 %v4480_v17, %v4683_v48 }
 0x2ad   :  { %3468 = vmatprep.mubr.f32.mxu1 %v4329_v2  ;;  %v4687_v6 = vand.u32 4294901760, %v4461_v51  ;;  %v1737_v36 = vsub.f32 %v4464_v53, %v4686_v21 }
 0x2ae   :  { %v4516_v7 = vpack.c.bf16 %v1665_v58, %v1662_v55  ;;  %v1745_v48 = vand.u32 4294901760, %v1744_v13  ;;  %v1771_v55 = vand.u32 4294901760, %v4514_v25 }
 0x2af   :  { %v1730_v34 = vsub.f32 %v4461_v51, %v4687_v6  ;;  %v1738_v4 = vand.u32 4294901760, %v1737_v36  ;;  %v1752_v36 = vand.u32 4294901760, %v1751_v63  ;;  %v1759_v63 = vand.u32 4294901760, %v1758_v38 }
 0x2b0   :  { %3469 = vmatmul.mubr.f32.gmra.mrb[4].mxu1 %v4342_v11  ;;  %v3783_v38 = vpack.c.bf16 %v4464_v53, %v4461_v51 }
 0x2b1   :  { %3471 = vmatprep.mubr.f32.mxu1 %v4350_v14  ;;  %v1731_v1 = vand.u32 4294901760, %v1730_v34  ;;  %v4518_v34 = vsub.f32 %v1642_v27, %v1665_v58  ;;  %v1765_v27 = vsub.f32 %v4496_v47, %v4685_v16  ;;  %v3774_v13 = vpack.c.bf16 %v1752_v36, %v1745_v48 }
 0x2b3   :  { %v3771_v28 = vpack.c.bf16 %v1738_v4, %v1731_v1  ;;  %v1778_v58 = vand.u32 4294901760, %v4518_v34  ;;  %v1766_v0 = vand.u32 4294901760, %v1765_v27  ;;  %v1772_v1 = vsub.f32 %v4514_v25, %v1771_v55 }
 0x2b4   :  { %3472 = vmatmul.mubr.f32.gmra.mrb[6].mxu1 %v4361_v20  ;;  %v3792_v48 = vpack.c.bf16 %v4518_v34, %v4514_v25  ;;  %v4690_v25 = vand.u32 4294901760, %v4480_v17 }
 0x2b5   :  { %3476 = vmatprep.mubr.f32.mxu1 %v4284_v40  ;;  %v1779_v4 = vsub.f32 %v4518_v34, %v1778_v58  ;;  %v1773_v16 = vand.u32 4294901760, %v1772_v1  ;;  %v3777_v6 = vpack.c.bf16 %v1766_v0, %v1759_v63  ;;  %v4689_v0 = vand.u32 4294901760, %v4464_v53 }
 0x2b6   :  { %v4691_v34 = vand.u32 4294901760, %v4475_v22  ;;  %v4693_v53 = vand.u32 4294901760, %v4496_v47 }
 0x2b7   :  { %v1780_v21 = vand.u32 4294901760, %v1779_v4 }
 0x2b8   :  { %3477 = vmatmul.mubr.f32.vlgmr.msra.gmra.mrb[0].mxu1 %v4306_v57  ;;  %v3810_v36 = vpack.c.bf16 %v4691_v34, %v4690_v25 }
 0x2b9   :  { %3760 = vmatpush3.bf16.msra.mxu1 %v4466_v56  ;;  %3479 = vmatprep.mubr.f32.mxu1 %v4311_v62 }
 0x2ba   :  { %3761 = vmatprep.subr.bf16.mxu1 %v4090_v32 }
 0x2bc   :  { %3480 = vmatmul.mubr.f32.gmra.mrb[2].mxu1 %v4324_v8 }
 0x2bd   :  { %3763 = vmatpush3.bf16.msra.mxu1 %v4478_v46  ;;  %3482 = vmatprep.mubr.f32.mxu1 %v4329_v2 }
 0x2be   :  { %3764 = vmatprep.subr.bf16.mxu1 %v4090_v32 }
 0x2c0   :  { %3483 = vmatmul.mubr.f32.gmra.mrb[4].mxu1 %v4342_v11 }
 0x2c1   :  { %3766 = vmatpush3.bf16.msra.mxu1 %v4500_v49  ;;  %3485 = vmatprep.mubr.f32.mxu1 %v4350_v14 }
 0x2c2   :  { %3767 = vmatprep.subr.bf16.mxu1 %v4090_v32 }
 0x2c4   :  { %3486 = vmatmul.mubr.f32.gmra.mrb[6].mxu1 %v4361_v20 }
 0x2c5   :  { %3769 = vmatpush3.bf16.msra.mxu1 %v4516_v7  ;;  %3504 = vmatprep.mubr.msk.f32.mxu1 %vm4091_vm0, %v4092_v33 }
 0x2c6   :  { %3770 = vmatprep.subr.bf16.mxu1 %v4090_v32 }
 0x2c8   :  { %3505 = vmatmul.mubr.f32.vlgmr.msra.gmra.mrb[8].mxu1 %v4203_v41  ;;  %v3780_v41 = vpack.c.bf16 %v1780_v21, %v1773_v16  ;;  %v3789_v21 = vpack.c.bf16 %v4496_v47, %v4494_v39 }
 0x2c9   :  { %3772 = vmatpush3.bf16.msra.mxu1 %v3771_v28  ;;  %3523 = vmatprep.mubr.msk.f32.mxu1 %vm4091_vm0, %v4092_v33 }
 0x2ca   :  { %3773 = vmatprep.subr.bf16.mxu1 %v4090_v32 }
 0x2cd   :  { %3775 = vmatpush3.bf16.msra.mxu1 %v3774_v13 }
 0x2ce   :  { %3776 = vmatprep.subr.bf16.mxu1 %v4090_v32 }
 0x2d1   :  { %3778 = vmatpush3.bf16.msra.mxu1 %v3777_v6  ;;  %v3786_v6 = vpack.c.bf16 %v4475_v22, %v4480_v17 }
 0x2d2   :  { %3779 = vmatprep.subr.bf16.mxu1 %v4090_v32 }
 0x2d5   :  { %3781 = vmatpush3.bf16.msra.mxu1 %v3780_v41 }
 0x2d6   :  { %3782 = vmatprep.subr.bf16.mxu1 %v4090_v32 }
 0x2d8   :  { %3524 = vmatmul.mubr.f32.vlgmr.msra.gmra.mrb[8].mxu1 %v4147_v60 }
 0x2d9   :  { %3784 = vmatpush3.bf16.msra.mxu1 %v3783_v38  ;;  %3542 = vmatprep.mubr.msk.f32.mxu1 %vm4091_vm0, %v4092_v33 }
 0x2da   :  { %3785 = vmatprep.subr.bf16.mxu1 %v4090_v32 }
 0x2dd   :  { %3787 = vmatpush3.bf16.msra.mxu1 %v3786_v6 }
 0x2de   :  { %3788 = vmatprep.subr.bf16.mxu1 %v4090_v32 }
 0x2e1   :  { %3790 = vmatpush3.bf16.msra.mxu1 %v3789_v21 }
 0x2e2   :  { %3791 = vmatprep.subr.bf16.mxu1 %v4090_v32 }
 0x2e5   :  { %3793 = vmatpush3.bf16.msra.mxu1 %v3792_v48 }
 0x2e6   :  { %3794 = vmatprep.subr.bf16.mxu1 %v4090_v32 }
 0x2e8   :  { %3543 = vmatmul.mubr.f32.vlgmr.msra.gmra.mrb[8].mxu1 %v4158_v5  ;;  %v4688_v5 = vand.u32 4294901760, %v4461_v51  ;;  %v4692_v51 = vand.u32 4294901760, %v4494_v39 }
 0x2e9   :  { %3796 = vmatpush3.bf16.msra.mxu1 %v4466_v56  ;;  %3561 = vmatprep.mubr.msk.f32.mxu1 %vm4091_vm0, %v4092_v33 }
 0x2ea   :  { %3797 = vmatprep.subr.bf16.mxu1 %v4090_v32  ;;  %v3807_v16 = vpack.c.bf16 %v4689_v0, %v4688_v5  ;;  %v3813_v28 = vpack.c.bf16 %v4693_v53, %v4692_v51 }
 0x2ed   :  { %3799 = vmatpush3.bf16.msra.mxu1 %v4478_v46 }
 0x2ee   :  { %3800 = vmatprep.subr.bf16.mxu1 %v4090_v32 }
 0x2f1   :  { %3802 = vmatpush3.bf16.msra.mxu1 %v4500_v49 }
 0x2f2   :  { %3803 = vmatprep.subr.bf16.mxu1 %v4090_v32 }
 0x2f5   :  { %3805 = vmatpush3.bf16.msra.mxu1 %v4516_v7 }
 0x2f6   :  { %3806 = vmatprep.subr.bf16.mxu1 %v4090_v32 }
 0x2f8   :  { %3562 = vmatmul.mubr.f32.vlgmr.msra.gmra.mrb[8].mxu1 %v4169_v15  ;;  %v3816_v15 = vpack.c.bf16 %v1778_v58, %v1771_v55 }
 0x2f9   :  { %3808 = vmatpush3.bf16.msra.mxu1 %v3807_v16  ;;  %3580 = vmatprep.mubr.msk.f32.mxu1 %vm4091_vm0, %v4092_v33 }
 0x2fa   :  { %3809 = vmatprep.subr.bf16.mxu1 %v4090_v32 }
 0x2fd   :  { %3811 = vmatpush3.bf16.msra.mxu1 %v3810_v36 }
 0x2fe   :  { %3812 = vmatprep.subr.bf16.mxu1 %v4090_v32 }
 0x301   :  { %3814 = vmatpush3.bf16.msra.mxu1 %v3813_v28 }
 0x302   :  { %3815 = vmatprep.subr.bf16.mxu1 %v4090_v32 }
 0x305   :  { %3817 = vmatpush3.bf16.msra.mxu1 %v3816_v15 }
 0x306   :  { %3818 = vmatprep.subr.bf16.mxu1 %v4090_v32 }
 0x308   :  { %3581 = vmatmul.mubr.f32.vlgmr.msra.gmra.mrb[8].mxu1 %v4147_v60 }
 0x309   :  { %3820 = vmatpush3.bf16.msra.mxu1 %v4466_v56  ;;  %3599 = vmatprep.mubr.msk.f32.mxu1 %vm4091_vm0, %v4092_v33  ;;  %v4094_v56 = vmov 0  }
 0x30a   :  { %3821 = vmatprep.subr.bf16.mxu1 %v4090_v32  ;;  %3941 = vset.pattern.permute.xlu0 %v4094_v56 }
 0x30b   :  { %3942 = vset.pattern.permute.xlu1 %v4094_v56 }
 0x30d   :  { %3823 = vmatpush3.bf16.msra.mxu1 %v4478_v46 }
 0x30e   :  { %3824 = vmatprep.subr.bf16.mxu1 %v4090_v32 }
 0x311   :  { %3826 = vmatpush3.bf16.msra.mxu1 %v4500_v49 }
 0x312   :  { %3827 = vmatprep.subr.bf16.mxu1 %v4090_v32 }
 0x315   :  { %3829 = vmatpush3.bf16.msra.mxu1 %v4516_v7 }
 0x318   :  { %3600 = vmatmul.mubr.f32.vlgmr.msra.gmra.mrb[8].mxu1 %v4147_v60 }
 0x319   :  { %3613 = vmatprep.mubr.f32.mxu1 %v4413_v52 }
 0x38b   :  { %v3478_v33 = vpop.f32.mrb[0].mxu1 }
 0x38c   :  { %v1396_v22 = vpop.f32.mrb[1].mxu1  ;;  %v1443_v52 = vsub.f32 0.0, %v3478_v33 }
 0x38d   :  { %v1442_v17 = vsub.f32 0.0, %v1396_v22 }
 0x38e   :  { %v1452_v63 = vmul.f32 1.442695, %v1443_v52 }
 0x38f   :  { %v1450_v39 = vmul.f32 1.442695, %v1442_v17  ;;  %v3481_v46 = vpop.f32.mrb[2].mxu1 }
 0x390   :  { %v1408_v47 = vpop.f32.mrb[3].mxu1  ;;  %v1445_v4 = vsub.f32 0.0, %v3481_v46 }
 0x391   :  { %3943 = vpow2.f32 %v1450_v39  ;;  %v1444_v1 = vsub.f32 0.0, %v1408_v47 }
 0x392   :  { %v1456_v41 = vmul.f32 1.442695, %v1445_v4 }
 0x393   :  { %v3484_v27 = vpop.f32.mrb[4].mxu1  ;;  %v1454_v13 = vmul.f32 1.442695, %v1444_v1 }
 0x394   :  { %v1420_v49 = vpop.f32.mrb[5].mxu1  ;;  %v1447_v6 = vsub.f32 0.0, %v3484_v27 }
 0x395   :  { %v1446_v38 = vsub.f32 0.0, %v1420_v49 }
 0x396   :  { %v1460_v5 = vmul.f32 1.442695, %v1447_v6  ;;  %v4008_v6 = vld [vmem:[#allocation2 + $0x8] sm:$0xff] }
 0x397   :  { %v3487_v55 = vpop.f32.mrb[6].mxu1  ;;  %v1458_v21 = vmul.f32 1.442695, %v1446_v38 }
 0x398   :  { %v1432_v32 = vpop.f32.mrb[7].mxu1  ;;  %v1449_v34 = vsub.f32 0.0, %v3487_v55 }
 0x399   :  { %v1448_v0 = vsub.f32 0.0, %v1432_v32 }
 0x39a   :  { %v1464_v28 = vmul.f32 1.442695, %v1449_v34 }
 0x39b   :  { %v3944_v58 = vpop.eup %3943  ;;  %v1462_v36 = vmul.f32 1.442695, %v1448_v0 }
 0x39c   :  { %v1466_v7 = vadd.f32 1.0, %v3944_v58 }
 0x39e   :  { %3945 = vrcp.f32 %v1466_v7 }
 0x39f   :  { %3947 = vpow2.f32 %v1452_v63 }
 0x3a0   :  { %3949 = vpow2.f32 %v1454_v13 }
 0x3a1   :  { %3951 = vpow2.f32 %v1456_v41  ;;  %v4007_v41 = vld [vmem:[#allocation2] sm:$0xff] }
 0x3a2   :  { %3953 = vpow2.f32 %v1458_v21 }
 0x3a3   :  { %3955 = vpow2.f32 %v1460_v5 }
 0x3a8   :  { %v3946_v60 = vpop.eup %3945 }
 0x3a9   :  { %1492 = vperm.xlu0 %3941, %v3946_v60   ;;  %v3948_v48 = vpop.eup %3947 }
 0x3aa   :  { %v1467_v16 = vadd.f32 1.0, %v3948_v48  ;;  %v3950_v25 = vpop.eup %3949 }
 0x3ab   :  { %v1468_v51 = vadd.f32 1.0, %v3950_v25  ;;  %v3952_v53 = vpop.eup %3951 }
 0x3ac   :  { %3957 = vrcp.f32 %v1467_v16  ;;  %v1469_v15 = vadd.f32 1.0, %v3952_v53  ;;  %v3954_v33 = vpop.eup %3953 }
 0x3ad   :  { %3959 = vpow2.f32 %v1462_v36  ;;  %v1470_v39 = vadd.f32 1.0, %v3954_v33  ;;  %v3956_v46 = vpop.eup %3955 }
 0x3ae   :  { %3961 = vrcp.f32 %v1468_v51  ;;  %v1471_v27 = vadd.f32 1.0, %v3956_v46 }
 0x3af   :  { %3963 = vpow2.f32 %v1464_v28 }
 0x3b0   :  { %3965 = vrcp.f32 %v1469_v15 }
 0x3b1   :  { %3967 = vrcp.f32 %v1470_v39  ;;  %v4014_v39 = vld [vmem:[#allocation2 + $0x38] sm:$0xff] }
 0x3b2   :  { %3969 = vrcp.f32 %v1471_v27  ;;  %v4015_v27 = vld [vmem:[#allocation2 + $0x40] sm:$0xff] }
 0x3b6   :  { %v3958_v47 = vpop.eup %3957 }
 0x3b7   :  { %v3960_v49 = vpop.eup %3959 }
 0x3b8   :  { %v3962_v55 = vpop.eup %3961  ;;  %v1472_v32 = vadd.f32 1.0, %v3960_v49 }
 0x3b9   :  { %v3964_v58 = vpop.eup %3963 }
 0x3ba   :  { %v3966_v7 = vpop.eup %3965  ;;  %v1473_v60 = vadd.f32 1.0, %v3964_v58  ;;  %3971 = vrcp.f32 %v1472_v32 }
 0x3bb   :  { %v3968_v52 = vpop.eup %3967 }
 0x3bc   :  { %3973 = vrcp.f32 %v1473_v60  ;;  %v3970_v63 = vpop.eup %3969 }
 0x3c4   :  { %v3972_v1 = vpop.eup %3971 }
 0x3c6   :  { %v3974_v4 = vpop.eup %3973 }
 0x3eb   :  { %v2176_v56 = vpop.f32.mrb[8].mxu1 }
 0x3ec   :  { %v2180_v22 = vmax.f32 %v2176_v56, 0.0  ;;  %v3601_v17 = vpop.f32.mrb[9].mxu1 }
 0x3ee   :  { %2182 = vrot.lane.b32.xlu1 %v2180_v22, %s4093_s28 }
 0x3f2   :  { %1497 = vperm.xlu1 %3942, %v3958_v47  }
 0x3f6   :  { %1502 = vperm.xlu1 %3942, %v3962_v55   ;;  %v4016_v55 = vld [vmem:[#allocation2 + $0x48] sm:$0xff] }
 0x3fa   :  { %1507 = vperm.xlu1 %3942, %v3966_v7   ;;  %v4017_v7 = vld [vmem:[#allocation2 + $0x50] sm:$0xff] }
 0x3fe   :  { %1512 = vperm.xlu1 %3942, %v3968_v52   ;;  %v4018_v52 = vld [vmem:[#allocation2 + $0x58] sm:$0xff] }
 0x402   :  { %1517 = vperm.xlu1 %3942, %v3970_v63  }
 0x406   :  { %1522 = vperm.xlu1 %3942, %v3972_v1  }
 0x40a   :  { %1527 = vperm.xlu1 %3942, %v3974_v4   ;;  %v4019_v4 = vld [vmem:[#allocation2 + $0x60] sm:$0xff] }
 0x428   :  { %v1493_v13 = vpop.permute.xlu0 %1492 }
 0x429   :  { %v1530_v38 = vmul.f32 %v4007_v41, %v1493_v13  ;;  %v1531_v21 = vmul.f32 %v4008_v6, %v1493_v13  ;;  %v4020_v41 = vld [vmem:[#allocation2 + $0x68] sm:$0xff]  ;;  %v4021_v6 = vld [vmem:[#allocation2 + $0x70] sm:$0xff] }
 0x42b   :  { %1546 = vst [vmem:[#allocation5] sm:$0xff] %v1530_v38  ;;  %1547 = vst [vmem:[#allocation5 + $0x8] sm:$0xff] %v1531_v21  ;;  %v4022_v21 = vld [vmem:[#allocation2 + $0x78] sm:$0xff] }
 0x460   :  { %v2183_v48 = vpop.permute.xlu1 %2182 }
 0x461   :  { %v2185_v5 = vadd.f32 %v2183_v48, %v2180_v22  ;;  %v4013_v22 = vld [vmem:[#allocation2 + $0x30] sm:$0xff] }
 0x463   :  { %v2187_v0 = vsel %vm691_vm4, %v2185_v5, 0 }
 0x464   :  { %v4601_v16 = vand.u32 4294901760, %v2187_v0 }
 0x466   :  { %v2337_v25 = vsub.f32 %v2187_v0, %v4601_v16  ;;  %3602 = vmatprep.subr.mxu0 %v4601_v16  ;;  %3830 = vmatprep.subr.mxu1 %v4601_v16 }
 0x467   :  { %3603 = vmatpush3.msra.mxu0 %v4601_v16  ;;  %3831 = vmatpush3.msra.mxu1 %v4601_v16 }
 0x468   :  { %3605 = vmatmul.mubr.f32.vlgmr.msra.gmra.mrb[2].mxu0 %v4372_v26  ;;  %v4609_v34 = vand.u32 4294901760, %v2337_v25  ;;  %3614 = vmatmul.mubr.f32.vlgmr.msra.gmra.mrb[10].mxu1 %v4416_v54  ;;  %v4009_v26 = vld [vmem:[#allocation2 + $0x10] sm:$0xff]  ;;  %v4010_v54 = vld [vmem:[#allocation2 + $0x18] sm:$0xff] }
 0x469   :  { %3607 = vmatprep.mubr.f32.mxu0 %v4384_v31 }
 0x46a   :  { %v2339_v36 = vsub.f32 %v2337_v25, %v4609_v34 }
 0x46c   :  { %3608 = vmatmul.mubr.f32.gmra.mrb[4].mxu0 %v4395_v37  ;;  %v2340_v51 = vand.u32 4294901760, %v2339_v36  ;;  %v4011_v37 = vld [vmem:[#allocation2 + $0x20] sm:$0xff] }
 0x46d   :  { %3610 = vmatprep.mubr.f32.mxu0 %v4403_v45 }
 0x46e   :  { %3616 = vmatprep.subr.mxu0 %v2340_v51 }
 0x46f   :  { %3617 = vmatpush3.msra.mxu0 %v2340_v51 }
 0x470   :  { %3611 = vmatmul.mubr.f32.gmra.mrb[6].mxu0 %v4408_v50  ;;  %3630 = vmatprep.subr.mxu0 %v2337_v25  ;;  %v4012_v50 = vld [vmem:[#allocation2 + $0x28] sm:$0xff] }
 0x471   :  { %v1498_v53 = vpop.permute.xlu1 %1497  ;;  %3618 = vmatprep.mubr.f32.mxu0 %v4284_v40 }
 0x472   :  { %v1532_v28 = vmul.f32 %v4009_v26, %v1498_v53  ;;  %v1533_v15 = vmul.f32 %v4010_v54, %v1498_v53 }
 0x474   :  { %1548 = vst [vmem:[#allocation5 + $0x10] sm:$0xff] %v1532_v28  ;;  %1549 = vst [vmem:[#allocation5 + $0x18] sm:$0xff] %v1533_v15  ;;  %3619 = vmatmul.mubr.f32.vlgmr.msra.gmra.mrb[2].mxu0 %v4306_v57 }
 0x475   :  { %3631 = vmatpush3.msra.mxu0 %v2337_v25  ;;  %v1503_v31 = vpop.permute.xlu1 %1502  ;;  %3621 = vmatprep.mubr.f32.mxu0 %v4311_v62 }
 0x476   :  { %3644 = vmatprep.subr.mxu0 %v4601_v16  ;;  %v1534_v45 = vmul.f32 %v4011_v37, %v1503_v31  ;;  %v1535_v56 = vmul.f32 %v4012_v50, %v1503_v31 }
 0x478   :  { %1550 = vst [vmem:[#allocation5 + $0x20] sm:$0xff] %v1534_v45  ;;  %1551 = vst [vmem:[#allocation5 + $0x28] sm:$0xff] %v1535_v56  ;;  %3622 = vmatmul.mubr.f32.gmra.mrb[4].mxu0 %v4324_v8 }
 0x479   :  { %v1508_v33 = vpop.permute.xlu1 %1507  ;;  %3624 = vmatprep.mubr.f32.mxu0 %v4329_v2 }
 0x47a   :  { %v1536_v17 = vmul.f32 %v4013_v22, %v1508_v33  ;;  %v1537_v46 = vmul.f32 %v4014_v39, %v1508_v33 }
 0x47c   :  { %1552 = vst [vmem:[#allocation5 + $0x30] sm:$0xff] %v1536_v17  ;;  %1553 = vst [vmem:[#allocation5 + $0x38] sm:$0xff] %v1537_v46  ;;  %3625 = vmatmul.mubr.f32.gmra.mrb[6].mxu0 %v4342_v11 }
 0x47d   :  { %v1513_v47 = vpop.permute.xlu1 %1512  ;;  %3627 = vmatprep.mubr.f32.mxu0 %v4350_v14 }
 0x47e   :  { %v1538_v49 = vmul.f32 %v4015_v27, %v1513_v47  ;;  %v1539_v32 = vmul.f32 %v4016_v55, %v1513_v47 }
 0x480   :  { %1554 = vst [vmem:[#allocation5 + $0x40] sm:$0xff] %v1538_v49  ;;  %1555 = vst [vmem:[#allocation5 + $0x48] sm:$0xff] %v1539_v32  ;;  %3628 = vmatmul.mubr.f32.gmra.mrb[8].mxu0 %v4361_v20 }
 0x481   :  { %v1518_v58 = vpop.permute.xlu1 %1517  ;;  %3632 = vmatprep.mubr.f32.mxu0 %v4287_v42 }
 0x482   :  { %v1540_v60 = vmul.f32 %v4017_v7, %v1518_v58  ;;  %v1541_v63 = vmul.f32 %v4018_v52, %v1518_v58 }
 0x484   :  { %1556 = vst [vmem:[#allocation5 + $0x50] sm:$0xff] %v1540_v60  ;;  %1557 = vst [vmem:[#allocation5 + $0x58] sm:$0xff] %v1541_v63  ;;  %3633 = vmatmul.mubr.f32.vlgmr.msra.gmra.mrb[2].mxu0 %v4319_v3  ;;  %v4023_v63 = vld [vmem:[#allocation2 + $0x90] sm:$0xff] }
 0x485   :  { %3645 = vmatpush3.msra.mxu0 %v4601_v16  ;;  %v1523_v1 = vpop.permute.xlu1 %1522  ;;  %3635 = vmatprep.mubr.f32.mxu0 %v4327_v61 }
 0x486   :  { %3658 = vmatprep.subr.mxu0 %v4609_v34  ;;  %v1542_v13 = vmul.f32 %v4019_v4, %v1523_v1  ;;  %v1543_v38 = vmul.f32 %v4020_v41, %v1523_v1  ;;  %v4024_v4 = vld [vmem:[#allocation2 + $0x98] sm:$0xff] }
 0x488   :  { %1558 = vst [vmem:[#allocation5 + $0x60] sm:$0xff] %v1542_v13  ;;  %1559 = vst [vmem:[#allocation5 + $0x68] sm:$0xff] %v1543_v38  ;;  %3636 = vmatmul.mubr.f32.gmra.mrb[4].mxu0 %v4340_v10  ;;  %v4025_v38 = vld [vmem:[#allocation2 + $0x80] sm:$0xff] }
 0x489   :  { %v1528_v42 = vpop.permute.xlu1 %1527  ;;  %3638 = vmatprep.mubr.f32.mxu0 %v4348_v59 }
 0x48a   :  { %v1544_v3 = vmul.f32 %v4021_v6, %v1528_v42  ;;  %v1545_v48 = vmul.f32 %v4022_v21, %v1528_v42  ;;  %v4026_v6 = vld [vmem:[#allocation2 + $0x88] sm:$0xff] }
 0x48c   :  { %1560 = vst [vmem:[#allocation5 + $0x70] sm:$0xff] %v1544_v3  ;;  %1561 = vst [vmem:[#allocation5 + $0x78] sm:$0xff] %v1545_v48  ;;  %3639 = vmatmul.mubr.f32.gmra.mrb[6].mxu0 %v4359_v19  ;;  %v4027_v48 = vld [vmem:[#allocation2 + $0xb0] sm:$0xff] }
 0x48d   :  { %3641 = vmatprep.mubr.f32.mxu0 %v4369_v24 }
 0x490   :  { %3642 = vmatmul.mubr.f32.gmra.mrb[8].mxu0 %v4382_v30 }
 0x491   :  { %3646 = vmatprep.mubr.f32.mxu0 %v4290_v43 }
 0x494   :  { %3647 = vmatmul.mubr.f32.vlgmr.msra.gmra.mrb[2].mxu0 %v4337_v9 }
 0x495   :  { %3659 = vmatpush3.msra.mxu0 %v4609_v34  ;;  %3649 = vmatprep.mubr.f32.mxu0 %v4345_v12 }
 0x496   :  { %3672 = vmatprep.subr.mxu0 %v4601_v16 }
 0x498   :  { %3650 = vmatmul.mubr.f32.gmra.mrb[4].mxu0 %v4356_v18 }
 0x499   :  { %3652 = vmatprep.mubr.f32.mxu0 %v4366_v23 }
 0x49c   :  { %3653 = vmatmul.mubr.f32.gmra.mrb[6].mxu0 %v4379_v29 }
 0x49d   :  { %3655 = vmatprep.mubr.f32.mxu0 %v4389_v35 }
 0x4a0   :  { %3656 = vmatmul.mubr.f32.gmra.mrb[8].mxu0 %v4400_v44 }
 0x4a1   :  { %3660 = vmatprep.mubr.f32.mxu0 %v4284_v40 }
 0x4a4   :  { %3661 = vmatmul.mubr.f32.vlgmr.msra.gmra.mrb[2].mxu0 %v4306_v57 }
 0x4a5   :  { %3673 = vmatpush3.msra.mxu0 %v4601_v16  ;;  %3663 = vmatprep.mubr.f32.mxu0 %v4311_v62 }
 0x4a8   :  { %3664 = vmatmul.mubr.f32.gmra.mrb[4].mxu0 %v4324_v8 }
 0x4a9   :  { %3666 = vmatprep.mubr.f32.mxu0 %v4329_v2 }
 0x4ac   :  { %3667 = vmatmul.mubr.f32.gmra.mrb[6].mxu0 %v4342_v11 }
 0x4ad   :  { %3669 = vmatprep.mubr.f32.mxu0 %v4350_v14 }
 0x4b0   :  { %3670 = vmatmul.mubr.f32.gmra.mrb[8].mxu0 %v4361_v20 }
 0x4b1   :  { %3674 = vmatprep.mubr.f32.mxu0 %v4284_v40 }
 0x4b4   :  { %3675 = vmatmul.mubr.f32.vlgmr.msra.gmra.mrb[2].mxu0 %v4306_v57 }
 0x4b5   :  { %3677 = vmatprep.mubr.f32.mxu0 %v4311_v62 }
 0x4b8   :  { %3678 = vmatmul.mubr.f32.gmra.mrb[4].mxu0 %v4324_v8 }
 0x4b9   :  { %3680 = vmatprep.mubr.f32.mxu0 %v4329_v2 }
 0x4bc   :  { %3681 = vmatmul.mubr.f32.gmra.mrb[6].mxu0 %v4342_v11 }
 0x4bd   :  { %3683 = vmatprep.mubr.f32.mxu0 %v4350_v14 }
 0x4c0   :  { %3684 = vmatmul.mubr.f32.gmra.mrb[8].mxu0 %v4361_v20 }
 0x53b   :  { %v3615_v43 = vpop.f32.mrb[10].mxu1 }
 0x53c   :  { %v2321_v61 = vpop.f32.mrb[11].mxu1 }
 0x587   :  { %v3676_v9 = vpop.f32.mrb[2].mxu0 }
 0x588   :  { %v2937_v10 = vsub.f32 0.0, %v3676_v9  ;;  %v2890_v12 = vpop.f32.mrb[3].mxu0 }
 0x589   :  { %v2936_v40 = vsub.f32 0.0, %v2890_v12  ;;  %v4029_v12 = vld [vmem:[#allocation2 + $0xa0] sm:$0xff] }
 0x58a   :  { %v2946_v59 = vmul.f32 1.442695, %v2937_v10 }
 0x58b   :  { %v2944_v57 = vmul.f32 1.442695, %v2936_v40  ;;  %v3679_v18 = vpop.f32.mrb[4].mxu0 }
 0x58c   :  { %3975 = vpow2.f32 %v2946_v59  ;;  %v2939_v62 = vsub.f32 0.0, %v3679_v18  ;;  %v2902_v8 = vpop.f32.mrb[5].mxu0  ;;  %v4030_v59 = vld [vmem:[#allocation2 + $0xa8] sm:$0xff] }
 0x58d   :  { %3977 = vpow2.f32 %v2944_v57  ;;  %v2938_v2 = vsub.f32 0.0, %v2902_v8 }
 0x58e   :  { %v2950_v19 = vmul.f32 1.442695, %v2939_v62  ;;  %v4031_v62 = vld [vmem:[#allocation2 + $0xd0] sm:$0xff] }
 0x58f   :  { %v2948_v11 = vmul.f32 1.442695, %v2938_v2  ;;  %v3682_v23 = vpop.f32.mrb[6].mxu0  ;;  %v4032_v2 = vld [vmem:[#allocation2 + $0xd8] sm:$0xff] }
 0x590   :  { %3979 = vpow2.f32 %v2950_v19  ;;  %v2941_v14 = vsub.f32 0.0, %v3682_v23  ;;  %v2914_v20 = vpop.f32.mrb[7].mxu0  ;;  %v4033_v23 = vld [vmem:[#allocation2 + $0xc0] sm:$0xff] }
 0x591   :  { %3981 = vpow2.f32 %v2948_v11  ;;  %v2940_v24 = vsub.f32 0.0, %v2914_v20  ;;  %v4034_v20 = vld [vmem:[#allocation2 + $0xc8] sm:$0xff] }
 0x592   :  { %v2954_v29 = vmul.f32 1.442695, %v2941_v14 }
 0x593   :  { %v2952_v30 = vmul.f32 1.442695, %v2940_v24  ;;  %v3685_v35 = vpop.f32.mrb[8].mxu0 }
 0x594   :  { %3983 = vpow2.f32 %v2954_v29  ;;  %v3832_v44 = vadd.f32 %v3685_v35, %v3615_v43  ;;  %v2926_v5 = vpop.f32.mrb[9].mxu0 }
 0x595   :  { %3985 = vpow2.f32 %v2952_v30  ;;  %v3833_v0 = vadd.f32 %v2926_v5, %v2321_v61  ;;  %v4028_v61 = vld [vmem:[#allocation2 + $0xb8] sm:$0xff]  ;;  %v4035_v30 = vld [vmem:[#allocation2 + $0xf0] sm:$0xff] }
 0x596   :  { %v3976_v16 = vpop.eup %3975  ;;  %v2943_v25 = vsub.f32 0.0, %v3832_v44  ;;  %v4036_v44 = vld [vmem:[#allocation2 + $0xf8] sm:$0xff] }
 0x597   :  { %v3978_v34 = vpop.eup %3977  ;;  %v2961_v36 = vadd.f32 1.0, %v3976_v16  ;;  %v2942_v51 = vsub.f32 0.0, %v3833_v0  ;;  %v4037_v16 = vld [vmem:[#allocation2 + $0xe0] sm:$0xff] }
 0x598   :  { %v2960_v53 = vadd.f32 1.0, %v3978_v34  ;;  %v2958_v26 = vmul.f32 1.442695, %v2943_v25  ;;  %v4038_v34 = vld [vmem:[#allocation2 + $0xe8] sm:$0xff] }
 0x599   :  { %3987 = vrcp.f32 %v2961_v36  ;;  %v2956_v28 = vmul.f32 1.442695, %v2942_v51 }
 0x59a   :  { %v3980_v54 = vpop.eup %3979  ;;  %3989 = vrcp.f32 %v2960_v53 }
 0x59b   :  { %v3982_v15 = vpop.eup %3981  ;;  %v2963_v31 = vadd.f32 1.0, %v3980_v54  ;;  %3991 = vpow2.f32 %v2958_v26 }
 0x59c   :  { %v2962_v37 = vadd.f32 1.0, %v3982_v15  ;;  %3993 = vpow2.f32 %v2956_v28 }
 0x59d   :  { %3995 = vrcp.f32 %v2963_v31 }
 0x59e   :  { %v3984_v45 = vpop.eup %3983  ;;  %3997 = vrcp.f32 %v2962_v37 }
 0x59f   :  { %v3986_v50 = vpop.eup %3985  ;;  %v2965_v56 = vadd.f32 1.0, %v3984_v45 }
 0x5a0   :  { %v2964_v33 = vadd.f32 1.0, %v3986_v50 }
 0x5a1   :  { %3999 = vrcp.f32 %v2965_v56 }
 0x5a2   :  { %4001 = vrcp.f32 %v2964_v33 }
 0x5a3   :  { %v3988_v22 = vpop.eup %3987 }
 0x5a4   :  { %v3990_v17 = vpop.eup %3989  ;;  %2991 = vperm.xlu1 %3942, %v3988_v22  }
 0x5a5   :  { %v3992_v39 = vpop.eup %3991  ;;  %2986 = vperm.xlu0 %3941, %v3990_v17  }
 0x5a6   :  { %v3994_v46 = vpop.eup %3993  ;;  %v2967_v47 = vadd.f32 1.0, %v3992_v39 }
 0x5a7   :  { %v3996_v27 = vpop.eup %3995  ;;  %v2966_v49 = vadd.f32 1.0, %v3994_v46 }
 0x5a8   :  { %v3998_v55 = vpop.eup %3997  ;;  %4003 = vrcp.f32 %v2967_v47  ;;  %3001 = vperm.xlu1 %3942, %v3996_v27  }
 0x5a9   :  { %4005 = vrcp.f32 %v2966_v49  ;;  %2996 = vperm.xlu0 %3941, %v3998_v55  }
 0x5ab   :  { %v4000_v32 = vpop.eup %3999 }
 0x5ac   :  { %v4002_v58 = vpop.eup %4001  ;;  %3011 = vperm.xlu1 %3942, %v4000_v32  }
 0x5ad   :  { %3006 = vperm.xlu0 %3941, %v4002_v58  }
 0x5b2   :  { %v4004_v7 = vpop.eup %4003 }
 0x5b3   :  { %v4006_v60 = vpop.eup %4005  ;;  %3021 = vperm.xlu1 %3942, %v4004_v7  }
 0x5b4   :  { %3016 = vperm.xlu0 %3941, %v4006_v60  }
 0x623   :  { %v2992_v52 = vpop.permute.xlu1 %2991 }
 0x624   :  { %v3026_v1 = vmul.f32 %v4023_v63, %v2992_v52  ;;  %v3027_v13 = vmul.f32 %v4024_v4, %v2992_v52  ;;  %v2987_v41 = vpop.permute.xlu0 %2986 }
 0x625   :  { %v3024_v42 = vmul.f32 %v4025_v38, %v2987_v41  ;;  %v3025_v3 = vmul.f32 %v4026_v6, %v2987_v41 }
 0x626   :  { %3043 = vst [vmem:[#allocation5 + $0x90] sm:$0xff] %v3026_v1  ;;  %3044 = vst [vmem:[#allocation5 + $0x98] sm:$0xff] %v3027_v13 }
 0x627   :  { %3041 = vst [vmem:[#allocation5 + $0x80] sm:$0xff] %v3024_v42  ;;  %3042 = vst [vmem:[#allocation5 + $0x88] sm:$0xff] %v3025_v3  ;;  %v3002_v21 = vpop.permute.xlu1 %3001 }
 0x628   :  { %v3030_v43 = vmul.f32 %v4027_v48, %v3002_v21  ;;  %v3031_v9 = vmul.f32 %v4028_v61, %v3002_v21  ;;  %v2997_v10 = vpop.permute.xlu0 %2996 }
 0x629   :  { %v3028_v40 = vmul.f32 %v4029_v12, %v2997_v10  ;;  %v3029_v57 = vmul.f32 %v4030_v59, %v2997_v10 }
 0x62a   :  { %3047 = vst [vmem:[#allocation5 + $0xb0] sm:$0xff] %v3030_v43  ;;  %3048 = vst [vmem:[#allocation5 + $0xb8] sm:$0xff] %v3031_v9 }
 0x62b   :  { %3045 = vst [vmem:[#allocation5 + $0xa0] sm:$0xff] %v3028_v40  ;;  %3046 = vst [vmem:[#allocation5 + $0xa8] sm:$0xff] %v3029_v57  ;;  %v3012_v18 = vpop.permute.xlu1 %3011 }
 0x62c   :  { %v3034_v8 = vmul.f32 %v4031_v62, %v3012_v18  ;;  %v3035_v19 = vmul.f32 %v4032_v2, %v3012_v18  ;;  %v3007_v11 = vpop.permute.xlu0 %3006 }
 0x62d   :  { %v3032_v14 = vmul.f32 %v4033_v23, %v3007_v11  ;;  %v3033_v24 = vmul.f32 %v4034_v20, %v3007_v11 }
 0x62e   :  { %3051 = vst [vmem:[#allocation5 + $0xd0] sm:$0xff] %v3034_v8  ;;  %3052 = vst [vmem:[#allocation5 + $0xd8] sm:$0xff] %v3035_v19 }
 0x62f   :  { %3049 = vst [vmem:[#allocation5 + $0xc0] sm:$0xff] %v3032_v14  ;;  %3050 = vst [vmem:[#allocation5 + $0xc8] sm:$0xff] %v3033_v24 }
 0x632   :  { %v3022_v29 = vpop.permute.xlu1 %3021 }
 0x633   :  { %v3038_v35 = vmul.f32 %v4035_v30, %v3022_v29  ;;  %v3039_v5 = vmul.f32 %v4036_v44, %v3022_v29  ;;  %v3017_v0 = vpop.permute.xlu0 %3016 }
 0x634   :  { %v3036_v25 = vmul.f32 %v4037_v16, %v3017_v0  ;;  %v3037_v36 = vmul.f32 %v4038_v34, %v3017_v0 }
 0x635   :  { %3055 = vst [vmem:[#allocation5 + $0xf0] sm:$0xff] %v3038_v35  ;;  %3056 = vst [vmem:[#allocation5 + $0xf8] sm:$0xff] %v3039_v5 }
 0x636   :  { %3053 = vst [vmem:[#allocation5 + $0xe0] sm:$0xff] %v3036_v25  ;;  %3054 = vst [vmem:[#allocation5 + $0xe8] sm:$0xff] %v3037_v36 }
 0x637   :  { %4072 = shalt.err (!%p4069_p12)
}
 0x638   :  { %s4073_s20 = scalar_lea.hbm %s4681_s3, 4096 }
 0x639   :  { %p4074_p13 = scmp.ne.s32.totalorder %s4681_s3, %s4073_s20  ;;  %p4077_p0 = scmp.lt.u32.totalorder %s4073_s20, %s4681_s3 }
 0x63b   :  { %p4079_p1 = pnand %p4077_p0, %p4074_p13 }
 0x63d   :  { %4082 = shalt.err (!%p4079_p1)
}
 0x63e   :  { %3068 = dma.vmem_to_hbm [thread:$0]  %s3063_s16, 4096, %s4681_s3, [#allocation4], %s4088_s22, %s4088_s22, %s4089_s23  }
 0x63f   :  { %4085 = dma.done.wait [#allocation4], 4096  }
 0x640   :  { %4086 = vsyncadd [#allocation4], 4294963200 }
 0x641   :  { %3072 = vsyncpa [#allocation3], 1 }
 0x642   :  { %3073 = vsyncpa [#allocation4], 1 }

</bundles_post_ra>
